<compile_context>
chip_gen: v6e
topology: v6e:2x2x1
jax: 0.10.0
libtpu: 0.0.40
codegen_flags: <defaults>
</compile_context>

<pallas_src>
import jax
import jax.numpy as jnp
from jax.experimental import pallas as pl
from jax.experimental.pallas import tpu as pltpu

INPUT_DIM = 784
LATENT_DIM = 128
H1, H2 = 512, 256
D_PAD = 896  # 784 rounded up to a multiple of 128 (7 * 128)


def _round_up(n, m):
    return ((n + m - 1) // m) * m


def autoencoder_kernel(x_ref,
                       w1_ref, b1_ref,
                       w2_ref, b2_ref,
                       w3_ref, b3_ref,
                       w4_ref, b4_ref,
                       w5_ref, b5_ref,
                       out_ref):
    """Fused forward pass: all 5 Linear layers + activations in one grid step."""
    x = x_ref[...]  # (bt, 896) f32

    def mm(a, w_ref):
        # bf16 MXU inputs, f32 accumulation.
        return jnp.dot(a.astype(jnp.bfloat16), w_ref[...],
                       preferred_element_type=jnp.float32)

    # ---- encoder ----
    h = jnp.maximum(mm(x, w1_ref) + b1_ref[...], 0.0)   # (bt, 512)
    h = jnp.maximum(mm(h, w2_ref) + b2_ref[...], 0.0)   # (bt, 256)
    z = mm(h, w3_ref) + b3_ref[...]                     # (bt, 128)

    # ---- decoder ----
    d = jnp.maximum(mm(z, w4_ref) + b4_ref[...], 0.0)   # (bt, 256)
    out_ref[...] = jnp.tanh(mm(d, w5_ref) + b5_ref[...])  # (bt, 896)


def autoencoder_forward(x, params, *, batch_tile=256):
    """x: (B, 784) f32. params: transposed (in, out) f32 weights, (1, out) biases."""
    B, D = x.shape
    assert D == INPUT_DIM

    # Pick a tile no larger than needed, then pad the batch to a multiple of it.
    bt = min(batch_tile, _round_up(B, 8))
    B_pad = _round_up(B, bt)

    # Zero-pad batch rows and the 784 feature dim -> 896 (lane-dense I/O).
    x_p = jnp.zeros((B_pad, D_PAD), jnp.float32).at[:B, :INPUT_DIM].set(x)

    # Weights: bf16, pad w1 rows / w5 cols / b5 with zeros (numerically neutral).
    w1 = jnp.zeros((D_PAD, H1), jnp.bfloat16).at[:INPUT_DIM, :].set(
        params["w1"].astype(jnp.bfloat16))
    w2 = params["w2"].astype(jnp.bfloat16)
    w3 = params["w3"].astype(jnp.bfloat16)
    w4 = params["w4"].astype(jnp.bfloat16)
    w5 = jnp.zeros((H2, D_PAD), jnp.bfloat16).at[:, :INPUT_DIM].set(
        params["w5"].astype(jnp.bfloat16))
    b1 = params["b1"].astype(jnp.float32)
    b2 = params["b2"].astype(jnp.float32)
    b3 = params["b3"].astype(jnp.float32)
    b4 = params["b4"].astype(jnp.float32)
    b5 = jnp.zeros((1, D_PAD), jnp.float32).at[:, :INPUT_DIM].set(
        params["b5"].astype(jnp.float32))

    def resident(shape):
        # Whole array in VMEM; constant block index => never re-DMA'd.
        return pl.BlockSpec(shape, lambda i: (0, 0))

    grid = (B_pad // bt,)

    # Advisory cost estimate for the XLA scheduler.
    mac = (D_PAD * H1 + H1 * H2 + H2 * LATENT_DIM + LATENT_DIM * H2 + H2 * D_PAD)
    weight_bytes = 2 * mac  # bf16 weights
    bias_bytes = 4 * (H1 + H2 + LATENT_DIM + H2 + D_PAD)
    cost = pl.CostEstimate(
        flops=2 * B_pad * mac,
        transcendentals=B_pad * D_PAD,                       # tanh
        bytes_accessed=2 * B_pad * D_PAD * 4 + weight_bytes + bias_bytes,
    )

    out = pl.pallas_call(
        autoencoder_kernel,
        out_shape=jax.ShapeDtypeStruct((B_pad, D_PAD), jnp.float32),
        grid_spec=pltpu.PrefetchScalarGridSpec(
            num_scalar_prefetch=0,
            grid=grid,
            in_specs=[
                pl.BlockSpec((bt, D_PAD), lambda i: (i, 0)),  # x tile
                resident(w1.shape), resident(b1.shape),
                resident(w2.shape), resident(b2.shape),
                resident(w3.shape), resident(b3.shape),
                resident(w4.shape), resident(b4.shape),
                resident(w5.shape), resident(b5.shape),
            ],
            out_specs=pl.BlockSpec((bt, D_PAD), lambda i: (i, 0)),
        ),
        compiler_params=pltpu.CompilerParams(
            dimension_semantics=("parallel",),     # shards batch tiles across TCs on v7x
            vmem_limit_bytes=48 * 1024 * 1024,     # headroom for larger batch_tile overrides
        ),
        cost_estimate=cost,
    )(x_p, w1, b1, w2, b2, w3, b3, w4, b4, w5, b5)

    return out[:B, :INPUT_DIM]


def init_params(key):
    """PyTorch Linear default init (U[-1/sqrt(in), 1/sqrt(in)]), weights stored (in, out)."""
    dims = [(INPUT_DIM, H1), (H1, H2), (H2, LATENT_DIM),
            (LATENT_DIM, H2), (H2, INPUT_DIM)]
    params = {}
    keys = jax.random.split(key, 2 * len(dims))
    for idx, (fan_in, fan_out) in enumerate(dims):
        bound = 1.0 / jnp.sqrt(jnp.float32(fan_in))
        params[f"w{idx + 1}"] = jax.random.uniform(
            keys[2 * idx], (fan_in, fan_out), minval=-bound, maxval=bound,
            dtype=jnp.float32)
        params[f"b{idx + 1}"] = jax.random.uniform(
            keys[2 * idx + 1], (1, fan_out), minval=-bound, maxval=bound,
            dtype=jnp.float32)
    return params


def reference_forward_f32(x, p):
    h = jnp.maximum(x @ p["w1"] + p["b1"], 0.0)
    h = jnp.maximum(h @ p["w2"] + p["b2"], 0.0)
    z = h @ p["w3"] + p["b3"]
    d = jnp.maximum(z @ p["w4"] + p["b4"], 0.0)
    return jnp.tanh(d @ p["w5"] + p["b5"])


def reference_forward_bf16(x, p):
    """Same bf16-matmul / f32-accumulate recipe as the kernel (tight tolerance)."""
    def mm(a, w):
        return jnp.dot(a.astype(jnp.bfloat16), w.astype(jnp.bfloat16),
                       preferred_element_type=jnp.float32)
    h = jnp.maximum(mm(x, p["w1"]) + p["b1"], 0.0)
    h = jnp.maximum(mm(h, p["w2"]) + p["b2"], 0.0)
    z = mm(h, p["w3"]) + p["b3"]
    d = jnp.maximum(mm(z, p["w4"]) + p["b4"], 0.0)
    return jnp.tanh(mm(d, p["w5"]) + p["b5"])


if __name__ == "__main__":
    key = jax.random.PRNGKey(0)
    pkey, xkey = jax.random.split(key)
    params = init_params(pkey)

    # Small batch, deliberately not a multiple of 8, to exercise batch +
    # feature padding and output slicing.
    B = 20
    x = jax.random.normal(xkey, (B, INPUT_DIM), dtype=jnp.float32)

    out = jax.block_until_ready(autoencoder_forward(x, params))
    assert out.shape == (B, INPUT_DIM)
    assert jnp.allclose(out, reference_forward_bf16(x, params),
                        atol=2e-3, rtol=2e-3), "mismatch vs bf16-matched reference"
    assert jnp.allclose(out, reference_forward_f32(x, params),
                        atol=5e-2, rtol=5e-2), "mismatch vs f32 reference"

    # Second run with >= 2 grid steps (512 rows, 256-row tiles) to exercise the
    # pipelined / multi-tile path (and both TCs on v7x).
    B2 = 512
    x2 = jax.random.normal(jax.random.PRNGKey(1), (B2, INPUT_DIM), dtype=jnp.float32)
    out2 = jax.block_until_ready(autoencoder_forward(x2, params, batch_tile=256))
    assert out2.shape == (B2, INPUT_DIM)
    assert jnp.allclose(out2, reference_forward_bf16(x2, params),
                        atol=2e-3, rtol=2e-3), "mismatch vs bf16 reference (multi-tile)"

    print("KERNEL_OK")
</pallas_src>

<mosaic_0001>
module attributes {stable_mosaic.version = 11 : i64} {
  func.func @autoencoder_kernel(%arg0: i32, %arg1: memref<24x896xf32, #tpu.memory_space<vmem>>, %arg2: memref<896x512xbf16, #tpu.memory_space<vmem>>, %arg3: memref<1x512xf32, #tpu.memory_space<vmem>>, %arg4: memref<512x256xbf16, #tpu.memory_space<vmem>>, %arg5: memref<1x256xf32, #tpu.memory_space<vmem>>, %arg6: memref<256x128xbf16, #tpu.memory_space<vmem>>, %arg7: memref<1x128xf32, #tpu.memory_space<vmem>>, %arg8: memref<128x256xbf16, #tpu.memory_space<vmem>>, %arg9: memref<1x256xf32, #tpu.memory_space<vmem>>, %arg10: memref<256x896xbf16, #tpu.memory_space<vmem>>, %arg11: memref<1x896xf32, #tpu.memory_space<vmem>>, %arg12: memref<24x896xf32, #tpu.memory_space<vmem>>) attributes {dimension_semantics = [#tpu.dimension_semantics<parallel>], iteration_bounds = array<i64: 1>, scalar_prefetch = 0 : i64, scratch_operands = 0 : i64, tpu.core_type = #tpu.core_type<tc>, window_params = [{transform_indices = @transform_0, window_bounds = array<i64: 24, 896>}, {pipeline_mode = #tpu.pipeline_mode<synchronous>, transform_indices = @transform_1, window_bounds = array<i64: 896, 512>}, {pipeline_mode = #tpu.pipeline_mode<synchronous>, transform_indices = @transform_2, window_bounds = array<i64: 1, 512>}, {pipeline_mode = #tpu.pipeline_mode<synchronous>, transform_indices = @transform_3, window_bounds = array<i64: 512, 256>}, {pipeline_mode = #tpu.pipeline_mode<synchronous>, transform_indices = @transform_4, window_bounds = array<i64: 1, 256>}, {pipeline_mode = #tpu.pipeline_mode<synchronous>, transform_indices = @transform_5, window_bounds = array<i64: 256, 128>}, {pipeline_mode = #tpu.pipeline_mode<synchronous>, transform_indices = @transform_6, window_bounds = array<i64: 1, 128>}, {pipeline_mode = #tpu.pipeline_mode<synchronous>, transform_indices = @transform_7, window_bounds = array<i64: 128, 256>}, {pipeline_mode = #tpu.pipeline_mode<synchronous>, transform_indices = @transform_8, window_bounds = array<i64: 1, 256>}, {pipeline_mode = #tpu.pipeline_mode<synchronous>, transform_indices = @transform_9, window_bounds = array<i64: 256, 896>}, {pipeline_mode = #tpu.pipeline_mode<synchronous>, transform_indices = @transform_10, window_bounds = array<i64: 1, 896>}, {transform_indices = @transform_11, window_bounds = array<i64: 24, 896>}]} {
    %c0 = arith.constant 0 : index
    %c0_0 = arith.constant 0 : index
    %0 = vector.load %arg1[%c0, %c0_0] : memref<24x896xf32, #tpu.memory_space<vmem>>, vector<24x896xf32>
    %1 = arith.truncf %0 : vector<24x896xf32> to vector<24x896xbf16>
    %c0_1 = arith.constant 0 : index
    %c0_2 = arith.constant 0 : index
    %2 = vector.load %arg2[%c0_1, %c0_2] : memref<896x512xbf16, #tpu.memory_space<vmem>>, vector<896x512xbf16>
    %cst = arith.constant dense<0.000000e+00> : vector<24x512xf32>
    %3 = tpu.matmul %1, %2, %cst {dimension_numbers = #tpu.dot_dimension_numbers<[1], [0], [0], [1], [0, 0, 1, 1], [], []>} : vector<24x896xbf16>, vector<896x512xbf16>, vector<24x512xf32> -> vector<24x512xf32>
    %c0_3 = arith.constant 0 : index
    %c0_4 = arith.constant 0 : index
    %4 = vector.load %arg3[%c0_3, %c0_4] : memref<1x512xf32, #tpu.memory_space<vmem>>, vector<1x512xf32>
    %5 = vector.broadcast %4 : vector<1x512xf32> to vector<24x512xf32>
    %6 = arith.addf %3, %5 : vector<24x512xf32>
    %cst_5 = arith.constant 0.000000e+00 : f32
    %7 = vector.broadcast %cst_5 : f32 to vector<24x512xf32>
    %8 = arith.maximumf %6, %7 : vector<24x512xf32>
    %9 = arith.truncf %8 : vector<24x512xf32> to vector<24x512xbf16>
    %c0_6 = arith.constant 0 : index
    %c0_7 = arith.constant 0 : index
    %10 = vector.load %arg4[%c0_6, %c0_7] : memref<512x256xbf16, #tpu.memory_space<vmem>>, vector<512x256xbf16>
    %cst_8 = arith.constant dense<0.000000e+00> : vector<24x256xf32>
    %11 = tpu.matmul %9, %10, %cst_8 {dimension_numbers = #tpu.dot_dimension_numbers<[1], [0], [0], [1], [0, 0, 1, 1], [], []>} : vector<24x512xbf16>, vector<512x256xbf16>, vector<24x256xf32> -> vector<24x256xf32>
    %c0_9 = arith.constant 0 : index
    %c0_10 = arith.constant 0 : index
    %12 = vector.load %arg5[%c0_9, %c0_10] : memref<1x256xf32, #tpu.memory_space<vmem>>, vector<1x256xf32>
    %13 = vector.broadcast %12 : vector<1x256xf32> to vector<24x256xf32>
    %14 = arith.addf %11, %13 : vector<24x256xf32>
    %cst_11 = arith.constant 0.000000e+00 : f32
    %15 = vector.broadcast %cst_11 : f32 to vector<24x256xf32>
    %16 = arith.maximumf %14, %15 : vector<24x256xf32>
    %17 = arith.truncf %16 : vector<24x256xf32> to vector<24x256xbf16>
    %c0_12 = arith.constant 0 : index
    %c0_13 = arith.constant 0 : index
    %18 = vector.load %arg6[%c0_12, %c0_13] : memref<256x128xbf16, #tpu.memory_space<vmem>>, vector<256x128xbf16>
    %cst_14 = arith.constant dense<0.000000e+00> : vector<24x128xf32>
    %19 = tpu.matmul %17, %18, %cst_14 {dimension_numbers = #tpu.dot_dimension_numbers<[1], [0], [0], [1], [0, 0, 1, 1], [], []>} : vector<24x256xbf16>, vector<256x128xbf16>, vector<24x128xf32> -> vector<24x128xf32>
    %c0_15 = arith.constant 0 : index
    %c0_16 = arith.constant 0 : index
    %20 = vector.load %arg7[%c0_15, %c0_16] : memref<1x128xf32, #tpu.memory_space<vmem>>, vector<1x128xf32>
    %21 = vector.broadcast %20 : vector<1x128xf32> to vector<24x128xf32>
    %22 = arith.addf %19, %21 : vector<24x128xf32>
    %23 = arith.truncf %22 : vector<24x128xf32> to vector<24x128xbf16>
    %c0_17 = arith.constant 0 : index
    %c0_18 = arith.constant 0 : index
    %24 = vector.load %arg8[%c0_17, %c0_18] : memref<128x256xbf16, #tpu.memory_space<vmem>>, vector<128x256xbf16>
    %cst_19 = arith.constant dense<0.000000e+00> : vector<24x256xf32>
    %25 = tpu.matmul %23, %24, %cst_19 {dimension_numbers = #tpu.dot_dimension_numbers<[1], [0], [0], [1], [0, 0, 1, 1], [], []>} : vector<24x128xbf16>, vector<128x256xbf16>, vector<24x256xf32> -> vector<24x256xf32>
    %c0_20 = arith.constant 0 : index
    %c0_21 = arith.constant 0 : index
    %26 = vector.load %arg9[%c0_20, %c0_21] : memref<1x256xf32, #tpu.memory_space<vmem>>, vector<1x256xf32>
    %27 = vector.broadcast %26 : vector<1x256xf32> to vector<24x256xf32>
    %28 = arith.addf %25, %27 : vector<24x256xf32>
    %cst_22 = arith.constant 0.000000e+00 : f32
    %29 = vector.broadcast %cst_22 : f32 to vector<24x256xf32>
    %30 = arith.maximumf %28, %29 : vector<24x256xf32>
    %31 = arith.truncf %30 : vector<24x256xf32> to vector<24x256xbf16>
    %c0_23 = arith.constant 0 : index
    %c0_24 = arith.constant 0 : index
    %32 = vector.load %arg10[%c0_23, %c0_24] : memref<256x896xbf16, #tpu.memory_space<vmem>>, vector<256x896xbf16>
    %cst_25 = arith.constant dense<0.000000e+00> : vector<24x896xf32>
    %33 = tpu.matmul %31, %32, %cst_25 {dimension_numbers = #tpu.dot_dimension_numbers<[1], [0], [0], [1], [0, 0, 1, 1], [], []>} : vector<24x256xbf16>, vector<256x896xbf16>, vector<24x896xf32> -> vector<24x896xf32>
    %c0_26 = arith.constant 0 : index
    %c0_27 = arith.constant 0 : index
    %34 = vector.load %arg11[%c0_26, %c0_27] : memref<1x896xf32, #tpu.memory_space<vmem>>, vector<1x896xf32>
    %35 = vector.broadcast %34 : vector<1x896xf32> to vector<24x896xf32>
    %36 = arith.addf %33, %35 : vector<24x896xf32>
    %37 = math.tanh %36 : vector<24x896xf32>
    %c0_28 = arith.constant 0 : index
    %c0_29 = arith.constant 0 : index
    %38 = vector.load %arg12[%c0_28, %c0_29] : memref<24x896xf32, #tpu.memory_space<vmem>>, vector<24x896xf32>
    tpu.vector_store %arg12[%c0_28, %c0_29], %37 {strides = array<i32>} : memref<24x896xf32, #tpu.memory_space<vmem>>, vector<24x896xf32>,
    return
  }
  func.func @transform_0(%arg0: i32) -> (i32, i32) {
    %c0_i32 = arith.constant 0 : i32
    %c0_i32_0 = arith.constant 0 : i32
    return %arg0, %c0_i32 : i32, i32
  }
  func.func @transform_1(%arg0: i32) -> (i32, i32) {
    %c0_i32 = arith.constant 0 : i32
    %c0_i32_0 = arith.constant 0 : i32
    %c0_i32_1 = arith.constant 0 : i32
    return %c0_i32, %c0_i32_0 : i32, i32
  }
  func.func @transform_2(%arg0: i32) -> (i32, i32) {
    %c0_i32 = arith.constant 0 : i32
    %c0_i32_0 = arith.constant 0 : i32
    %c0_i32_1 = arith.constant 0 : i32
    return %c0_i32, %c0_i32_0 : i32, i32
  }
  func.func @transform_3(%arg0: i32) -> (i32, i32) {
    %c0_i32 = arith.constant 0 : i32
    %c0_i32_0 = arith.constant 0 : i32
    %c0_i32_1 = arith.constant 0 : i32
    return %c0_i32, %c0_i32_0 : i32, i32
  }
  func.func @transform_4(%arg0: i32) -> (i32, i32) {
    %c0_i32 = arith.constant 0 : i32
    %c0_i32_0 = arith.constant 0 : i32
    %c0_i32_1 = arith.constant 0 : i32
    return %c0_i32, %c0_i32_0 : i32, i32
  }
  func.func @transform_5(%arg0: i32) -> (i32, i32) {
    %c0_i32 = arith.constant 0 : i32
    %c0_i32_0 = arith.constant 0 : i32
    %c0_i32_1 = arith.constant 0 : i32
    return %c0_i32, %c0_i32_0 : i32, i32
  }
  func.func @transform_6(%arg0: i32) -> (i32, i32) {
    %c0_i32 = arith.constant 0 : i32
    %c0_i32_0 = arith.constant 0 : i32
    %c0_i32_1 = arith.constant 0 : i32
    return %c0_i32, %c0_i32_0 : i32, i32
  }
  func.func @transform_7(%arg0: i32) -> (i32, i32) {
    %c0_i32 = arith.constant 0 : i32
    %c0_i32_0 = arith.constant 0 : i32
    %c0_i32_1 = arith.constant 0 : i32
    return %c0_i32, %c0_i32_0 : i32, i32
  }
  func.func @transform_8(%arg0: i32) -> (i32, i32) {
    %c0_i32 = arith.constant 0 : i32
    %c0_i32_0 = arith.constant 0 : i32
    %c0_i32_1 = arith.constant 0 : i32
    return %c0_i32, %c0_i32_0 : i32, i32
  }
  func.func @transform_9(%arg0: i32) -> (i32, i32) {
    %c0_i32 = arith.constant 0 : i32
    %c0_i32_0 = arith.constant 0 : i32
    %c0_i32_1 = arith.constant 0 : i32
    return %c0_i32, %c0_i32_0 : i32, i32
  }
  func.func @transform_10(%arg0: i32) -> (i32, i32) {
    %c0_i32 = arith.constant 0 : i32
    %c0_i32_0 = arith.constant 0 : i32
    %c0_i32_1 = arith.constant 0 : i32
    return %c0_i32, %c0_i32_0 : i32, i32
  }
  func.func @transform_11(%arg0: i32) -> (i32, i32) {
    %c0_i32 = arith.constant 0 : i32
    %c0_i32_0 = arith.constant 0 : i32
    return %arg0, %c0_i32 : i32, i32
  }
}

</mosaic_0001>

<bundles_post_ra>
// kernel: tpu_custom_call.1
= control target key start
LH: loop header
LB: loop body
LE: loop exit
PB: predicated region body
PF: predicated region fallthrough
CT: control target
= control target key end

     0   :  { %16 = vsyncpa [#allocation3], 0  ;;  %s5462_s0 = inlined_call_operand.hbm [shape: f32[24,896], index: 0, kind: input, shape index: {}]   ;;  %s5463_s1 = inlined_call_operand.hbm [shape: bf16[896,512], index: 1, kind: input, shape index: {}]   ;;  %s5464_s2 = inlined_call_operand.hbm [shape: f32[1,512], index: 2, kind: input, shape index: {}]   ;;  %s5465_s3 = inlined_call_operand.hbm [shape: bf16[512,256], index: 3, kind: input, shape index: {}]   ;;  %s5466_s4 = inlined_call_operand.vmem [shape: f32[1,256], index: 4, kind: input, shape index: {}]   ;;  %s5467_s5 = inlined_call_operand.hbm [shape: bf16[256,128], index: 5, kind: input, shape index: {}]   ;;  %s5468_s6 = inlined_call_operand.vmem [shape: f32[1,128], index: 6, kind: input, shape index: {}]   ;;  %s5469_s7 = inlined_call_operand.hbm [shape: bf16[128,256], index: 7, kind: input, shape index: {}]   ;;  %s5470_s8 = inlined_call_operand.vmem [shape: f32[1,256], index: 8, kind: input, shape index: {}]   ;;  %s5471_s9 = inlined_call_operand.hbm [shape: bf16[256,896], index: 9, kind: input, shape index: {}]   ;;  %s5472_s10 = inlined_call_operand.vmem [shape: f32[1,896], index: 10, kind: input, shape index: {}]   ;;  %s5473_s11 = inlined_call_operand.hbm [shape: f32[24,896], index: 11, kind: output, shape index: {}]  }
   0x1   :  { %17 = vsyncpa [#allocation6], 0 }
   0x2   :  { %18 = vsyncpa [#allocation9], 0 }
   0x3   :  { %19 = vsyncpa [#allocation12], 0 }
   0x4   :  { %20 = vsyncpa [#allocation4], 0  ;;  %s5180_s17 = smov [#allocation5]  }
   0x5   :  { %s38_s18 = sshll.u32 %s5180_s17, 4  ;;  %s39_s18 = int_to_ptr.vmem [resolvable:$true] %s38_s18 }
   0x6   :  { %s5018_s19 = scalar_lea.vmem %s39_s18, 28672  ;;  %p5023_p1 = scmp.lt.s32.totalorder %s39_s18, %s39_s18 }
   0x7   :  { %p5019_p0 = scmp.ne.s32.totalorder %s39_s18, %s5018_s19  ;;  %p5024_p2 = scmp.lt.s32.totalorder %s5018_s19, %s5018_s19 }
   0x9   :  { %p5025_p3 = por %p5024_p2, %p5023_p1 }
   0xb   :  { %p5026_p4 = pnand %p5025_p3, %p5019_p0 }
   0xd   :  { %5029 = shalt.err (!%p5026_p4)
}
   0xe   :  { %s5181_s20 = smov 256   ;;  %s5182_s21 = smov 16  }
   0xf   :  { %44 = dma.hbm_to_vmem [thread:$0]  %s5463_s1, 28672, %s39_s18, [#allocation6], %s5181_s20, %s5181_s20, %s5182_s21  }
  0x10   :  { %s5183_s24 = smov [#allocation8]  }
  0x11   :  { %s60_s25 = sshll.u32 %s5183_s24, 4  ;;  %s61_s25 = int_to_ptr.vmem [resolvable:$true] %s60_s25 }
  0x12   :  { %s5038_s26 = scalar_lea.vmem %s61_s25, 8192  ;;  %p5043_p6 = scmp.lt.s32.totalorder %s61_s25, %s61_s25 }
  0x13   :  { %p5039_p5 = scmp.ne.s32.totalorder %s61_s25, %s5038_s26  ;;  %p5044_p7 = scmp.lt.s32.totalorder %s5038_s26, %s5038_s26 }
  0x15   :  { %p5045_p8 = por %p5044_p7, %p5043_p6 }
  0x17   :  { %p5046_p9 = pnand %p5045_p8, %p5039_p5 }
  0x19   :  { %5049 = shalt.err (!%p5046_p9)
}
  0x1a   :  { %s5184_s27 = smov 128   ;;  %s5185_s28 = smov 8  }
  0x1b   :  { %66 = dma.hbm_to_vmem [thread:$0]  %s5465_s3, 8192, %s61_s25, [#allocation9], %s5184_s27, %s5184_s27, %s5185_s28  }
  0x1c   :  { %s5186_s12 = smov [#allocation11]   ;;  %s5187_s14 = smov [#allocation2]  }
  0x1d   :  { %s88_s13 = sshll.u32 %s5186_s12, 4  ;;  %s26_s1 = sshll.u32 %s5187_s14, 4  ;;  %s89_s13 = int_to_ptr.vmem [resolvable:$true] %s88_s13  ;;  %s27_s1 = int_to_ptr.vmem [resolvable:$true] %s26_s1 }
  0x1e   :  { %s5058_s15 = scalar_lea.vmem %s89_s13, 2048  ;;  %p5063_p11 = scmp.lt.s32.totalorder %s89_s13, %s89_s13 }
  0x1f   :  { %p5059_p10 = scmp.ne.s32.totalorder %s89_s13, %s5058_s15  ;;  %p5064_p12 = scmp.lt.s32.totalorder %s5058_s15, %s5058_s15 }
  0x21   :  { %p5065_p13 = por %p5064_p12, %p5063_p11 }
  0x23   :  { %p5066_p0 = pnand %p5065_p13, %p5059_p10 }
  0x25   :  { %5069 = shalt.err (!%p5066_p0)
}
  0x26   :  { %94 = dma.hbm_to_vmem [thread:$0]  %s5469_s7, 2048, %s89_s13, [#allocation12], %s5184_s27, %s5184_s27, %s5185_s28  }
  0x27   :  { %s5078_s18 = scalar_lea.vmem %s27_s1, 2688  ;;  %p5083_p2 = scmp.lt.s32.totalorder %s27_s1, %s27_s1 }
  0x28   :  { %p5079_p1 = scmp.ne.s32.totalorder %s27_s1, %s5078_s18  ;;  %p5084_p3 = scmp.lt.s32.totalorder %s5078_s18, %s5078_s18 }
  0x2a   :  { %p5085_p4 = por %p5084_p3, %p5083_p2 }
  0x2c   :  { %p5086_p5 = pnand %p5085_p4, %p5079_p1 }
  0x2e   :  { %5089 = shalt.err (!%p5086_p5)
}
  0x2f   :  { %s5188_s3 = smov 896   ;;  %s5189_s19 = smov 56  }
  0x30   :  { %32 = dma.hbm_to_vmem [thread:$0]  %s5462_s0, 2688, %s27_s1, [#allocation3], %s5188_s3, %s5188_s3, %s5189_s19  }
  0x31   :  { %s5190_s22 = smov [#allocation7]   ;;  %s5191_s24 = smov [#allocation10]  }
  0x32   :  { %s51_s23 = sshll.u32 %s5190_s22, 4  ;;  %s74_s7 = sshll.u32 %s5191_s24, 4  ;;  %s52_s23 = int_to_ptr.vmem [resolvable:$true] %s51_s23  ;;  %s75_s7 = int_to_ptr.vmem [resolvable:$true] %s74_s7 }
  0x33   :  { %s5098_s25 = scalar_lea.vmem %s52_s23, 64  ;;  %p5103_p7 = scmp.lt.s32.totalorder %s52_s23, %s52_s23 }
  0x34   :  { %p5099_p6 = scmp.ne.s32.totalorder %s52_s23, %s5098_s25  ;;  %p5104_p8 = scmp.lt.s32.totalorder %s5098_s25, %s5098_s25 }
  0x36   :  { %p5105_p9 = por %p5104_p8, %p5103_p7 }
  0x38   :  { %p5106_p10 = pnand %p5105_p9, %p5099_p6 }
  0x3a   :  { %5109 = shalt.err (!%p5106_p10)
}
  0x3b   :  { %54 = dma.hbm_to_vmem [thread:$0]  %s5464_s2, 64, %s52_s23, [#allocation6]  }
  0x3c   :  { %s5118_s28 = scalar_lea.vmem %s75_s7, 2048  ;;  %p5123_p12 = scmp.lt.s32.totalorder %s75_s7, %s75_s7 }
  0x3d   :  { %p5119_p11 = scmp.ne.s32.totalorder %s75_s7, %s5118_s28  ;;  %p5124_p13 = scmp.lt.s32.totalorder %s5118_s28, %s5118_s28 }
  0x3f   :  { %p5125_p0 = por %p5124_p13, %p5123_p12 }
  0x41   :  { %p5126_p1 = pnand %p5125_p0, %p5119_p11 }
  0x43   :  { %5129 = shalt.err (!%p5126_p1)
}
  0x44   :  { %s5192_s0 = smov 64   ;;  %s5193_s29 = smov 4  }
  0x45   :  { %80 = dma.hbm_to_vmem [thread:$0]  %s5467_s5, 2048, %s75_s7, [#allocation9], %s5192_s0, %s5192_s0, %s5193_s29  }
  0x46   :  { %s5194_s13 = smov [#allocation13]  }
  0x47   :  { %s102_s14 = sshll.u32 %s5194_s13, 4  ;;  %s103_s14 = int_to_ptr.vmem [resolvable:$true] %s102_s14 }
  0x48   :  { %s5138_s1 = scalar_lea.vmem %s103_s14, 14336  ;;  %p5143_p3 = scmp.lt.s32.totalorder %s103_s14, %s103_s14 }
  0x49   :  { %p5139_p2 = scmp.ne.s32.totalorder %s103_s14, %s5138_s1  ;;  %p5144_p4 = scmp.lt.s32.totalorder %s5138_s1, %s5138_s1 }
  0x4b   :  { %p5145_p5 = por %p5144_p4, %p5143_p3 }
  0x4d   :  { %p5146_p6 = pnand %p5145_p5, %p5139_p2 }
  0x4f   :  { %5149 = shalt.err (!%p5146_p6)
}
  0x50   :  { %s5195_s2 = smov 448   ;;  %s5196_s15 = smov 28  }
  0x51   :  { %108 = dma.hbm_to_vmem [thread:$0]  %s5471_s9, 14336, %s103_s14, [#allocation12], %s5195_s2, %s5195_s2, %s5196_s15  }
  0x52   :  { %5170 = dma.done.wait [#allocation3], 2688  }
  0x53   :  { %5171 = vsyncadd [#allocation3], 4294964608 }
  0x54   :  { %5172 = dma.done.wait [#allocation6], 28736  }
  0x55   :  { %5173 = vsyncadd [#allocation6], 4294938560 }
  0x56   :  { %5174 = dma.done.wait [#allocation9], 10240  }
  0x57   :  { %5175 = vsyncadd [#allocation9], 4294957056 }
  0x58   :  { %5176 = dma.done.wait [#allocation12], 16384  }
  0x59   :  { %5177 = vsyncadd [#allocation12], 4294950912  ;;  %v4336_v0 = vld [vmem:[#allocation5 + $0xe4] ss:$16 sps:$4 sm:$0xff]   ;;  %v4340_v2 = vld [vmem:[#allocation5 + $0xe0] ss:$16 sps:$4 sm:$0xff]  }
  0x5a   :  { %v4338_v1 = vld [vmem:[#allocation5 + $0x2e4] ss:$16 sps:$4 sm:$0xff]   ;;  %1534 = vmatprep.subr.bf16.mxu0 %v4336_v0  ;;  %v4341_v3 = vld [vmem:[#allocation5 + $0x2e0] ss:$16 sps:$4 sm:$0xff]   ;;  %v141_v47 = vld [vmem:[#allocation2 + $0x40] sm:$0xff] }
  0x5b   :  { %1585 = vmatprep.subr.bf16.mxu1 %v4338_v1  ;;  %v4342_v4 = vld [vmem:[#allocation5 + $0xc4] ss:$16 sps:$4 sm:$0xff]   ;;  %1535 = vmatpush1.bf16.msra.mxu0 %v4340_v2  ;;  %v4346_v6 = vld [vmem:[#allocation5 + $0xc0] ss:$16 sps:$4 sm:$0xff]   ;;  %v143_v49 = vld [vmem:[#allocation2 + $0x50] sm:$0xff] }
  0x5c   :  { %1586 = vmatpush1.bf16.msra.mxu1 %v4341_v3  ;;  %v4344_v5 = vld [vmem:[#allocation5 + $0x2c4] ss:$16 sps:$4 sm:$0xff]   ;;  %1536 = vmatprep.subr.bf16.mxu0 %v4342_v4  ;;  %v4347_v7 = vld [vmem:[#allocation5 + $0x2c0] ss:$16 sps:$4 sm:$0xff]  }
  0x5d   :  { %1587 = vmatprep.subr.bf16.mxu1 %v4344_v5  ;;  %v4348_v8 = vld [vmem:[#allocation5 + $0xa4] ss:$16 sps:$4 sm:$0xff]   ;;  %v4352_v10 = vld [vmem:[#allocation5 + $0xa0] ss:$16 sps:$4 sm:$0xff]  }
  0x5e   :  { %v4350_v9 = vld [vmem:[#allocation5 + $0x2a4] ss:$16 sps:$4 sm:$0xff]   ;;  %v4353_v11 = vld [vmem:[#allocation5 + $0x2a0] ss:$16 sps:$4 sm:$0xff]  }
  0x5f   :  { %1537 = vmatpush1.bf16.msra.mxu0 %v4346_v6  ;;  %v4354_v12 = vld [vmem:[#allocation5 + $0x84] ss:$16 sps:$4 sm:$0xff]   ;;  %v4358_v14 = vld [vmem:[#allocation5 + $0x80] ss:$16 sps:$4 sm:$0xff]   ;;  %v133_v6 = vld [vmem:[#allocation2] sm:$0xff] }
  0x60   :  { %1588 = vmatpush1.bf16.msra.mxu1 %v4347_v7  ;;  %1538 = vmatprep.subr.bf16.mxu0 %v4348_v8  ;;  %v4356_v13 = vld [vmem:[#allocation5 + $0x284] ss:$16 sps:$4 sm:$0xff]   ;;  %v4359_v15 = vld [vmem:[#allocation5 + $0x280] ss:$16 sps:$4 sm:$0xff]   ;;  %v135_v8 = vld [vmem:[#allocation2 + $0x10] sm:$0xff] }
  0x61   :  { %1589 = vmatprep.subr.bf16.mxu1 %v4350_v9  ;;  %v4360_v16 = vld [vmem:[#allocation5 + $0x64] ss:$16 sps:$4 sm:$0xff]   ;;  %v4364_v18 = vld [vmem:[#allocation5 + $0x60] ss:$16 sps:$4 sm:$0xff]  }
  0x62   :  { %v4362_v17 = vld [vmem:[#allocation5 + $0x264] ss:$16 sps:$4 sm:$0xff]   ;;  %v4365_v19 = vld [vmem:[#allocation5 + $0x260] ss:$16 sps:$4 sm:$0xff]  }
  0x63   :  { %1539 = vmatpush1.bf16.msra.mxu0 %v4352_v10  ;;  %v4366_v20 = vld [vmem:[#allocation5 + $0x44] ss:$16 sps:$4 sm:$0xff]   ;;  %v4370_v22 = vld [vmem:[#allocation5 + $0x40] ss:$16 sps:$4 sm:$0xff]  }
  0x64   :  { %1590 = vmatpush1.bf16.msra.mxu1 %v4353_v11  ;;  %1540 = vmatprep.subr.bf16.mxu0 %v4354_v12  ;;  %v4368_v21 = vld [vmem:[#allocation5 + $0x244] ss:$16 sps:$4 sm:$0xff]   ;;  %v4371_v23 = vld [vmem:[#allocation5 + $0x240] ss:$16 sps:$4 sm:$0xff]  }
  0x65   :  { %1591 = vmatprep.subr.bf16.mxu1 %v4356_v13  ;;  %v4372_v24 = vld [vmem:[#allocation5 + $0x24] ss:$16 sps:$4 sm:$0xff]   ;;  %v4376_v26 = vld [vmem:[#allocation5 + $0x20] ss:$16 sps:$4 sm:$0xff]  }
  0x66   :  { %v4374_v25 = vld [vmem:[#allocation5 + $0x224] ss:$16 sps:$4 sm:$0xff]   ;;  %v4377_v27 = vld [vmem:[#allocation5 + $0x220] ss:$16 sps:$4 sm:$0xff]  }
  0x67   :  { %1541 = vmatpush1.bf16.msra.mxu0 %v4358_v14  ;;  %v4378_v28 = vld [vmem:[#allocation5 + $0x4] ss:$16 sps:$4 sm:$0xff]   ;;  %v4382_v30 = vld [vmem:[#allocation5] ss:$16 sps:$4 sm:$0xff]  }
  0x68   :  { %1592 = vmatpush1.bf16.msra.mxu1 %v4359_v15  ;;  %1542 = vmatprep.subr.bf16.mxu0 %v4360_v16  ;;  %v4380_v29 = vld [vmem:[#allocation5 + $0x204] ss:$16 sps:$4 sm:$0xff]   ;;  %v4383_v31 = vld [vmem:[#allocation5 + $0x200] ss:$16 sps:$4 sm:$0xff]  }
  0x69   :  { %1593 = vmatprep.subr.bf16.mxu1 %v4362_v17  ;;  %v4384_v32 = vld [vmem:[#allocation5 + $0x1e4] ss:$16 sps:$4 sm:$0xff]   ;;  %v4388_v34 = vld [vmem:[#allocation5 + $0x1e0] ss:$16 sps:$4 sm:$0xff]  }
  0x6a   :  { %v4386_v33 = vld [vmem:[#allocation5 + $0x3e4] ss:$16 sps:$4 sm:$0xff]   ;;  %v4389_v35 = vld [vmem:[#allocation5 + $0x3e0] ss:$16 sps:$4 sm:$0xff]  }
  0x6b   :  { %1543 = vmatpush1.bf16.msra.mxu0 %v4364_v18  ;;  %v4390_v36 = vld [vmem:[#allocation5 + $0x1c4] ss:$16 sps:$4 sm:$0xff]   ;;  %v4394_v38 = vld [vmem:[#allocation5 + $0x1c0] ss:$16 sps:$4 sm:$0xff]  }
  0x6c   :  { %1594 = vmatpush1.bf16.msra.mxu1 %v4365_v19  ;;  %1544 = vmatprep.subr.bf16.mxu0 %v4366_v20  ;;  %v4392_v37 = vld [vmem:[#allocation5 + $0x3c4] ss:$16 sps:$4 sm:$0xff]   ;;  %v4395_v39 = vld [vmem:[#allocation5 + $0x3c0] ss:$16 sps:$4 sm:$0xff]  }
  0x6d   :  { %1595 = vmatprep.subr.bf16.mxu1 %v4368_v21  ;;  %v4396_v40 = vld [vmem:[#allocation5 + $0x1a4] ss:$16 sps:$4 sm:$0xff]   ;;  %v4400_v42 = vld [vmem:[#allocation5 + $0x1a0] ss:$16 sps:$4 sm:$0xff]  }
  0x6e   :  { %v4398_v41 = vld [vmem:[#allocation5 + $0x3a4] ss:$16 sps:$4 sm:$0xff]   ;;  %v4401_v43 = vld [vmem:[#allocation5 + $0x3a0] ss:$16 sps:$4 sm:$0xff]  }
  0x6f   :  { %1545 = vmatpush1.bf16.msra.mxu0 %v4370_v22  ;;  %v4402_v44 = vld [vmem:[#allocation5 + $0x184] ss:$16 sps:$4 sm:$0xff]   ;;  %v4406_v50 = vld [vmem:[#allocation5 + $0x180] ss:$16 sps:$4 sm:$0xff]  }
  0x70   :  { %1596 = vmatpush1.bf16.msra.mxu1 %v4371_v23  ;;  %1546 = vmatprep.subr.bf16.mxu0 %v4372_v24  ;;  %v4404_v45 = vld [vmem:[#allocation5 + $0x384] ss:$16 sps:$4 sm:$0xff]   ;;  %v4407_v51 = vld [vmem:[#allocation5 + $0x380] ss:$16 sps:$4 sm:$0xff]   ;;  %v149_v24 = vld [vmem:[#allocation2 + $0x80] sm:$0xff] }
  0x71   :  { %1597 = vmatprep.subr.bf16.mxu1 %v4374_v25  ;;  %v134_v46 = vld [vmem:[#allocation2 + $0x8] sm:$0xff]  ;;  %v136_v48 = vld [vmem:[#allocation2 + $0x18] sm:$0xff]  ;;  %v147_v25 = vld [vmem:[#allocation2 + $0x70] sm:$0xff] }
  0x72   :  { %v4408_v52 = vld [vmem:[#allocation5 + $0x164] ss:$16 sps:$4 sm:$0xff]   ;;  %v5283_v53 = vpack.c.bf16 %v141_v47, %v134_v46  ;;  %v5285_v54 = vpack.c.bf16 %v143_v49, %v136_v48  ;;  %v4412_v56 = vld [vmem:[#allocation5 + $0x160] ss:$16 sps:$4 sm:$0xff]  }
  0x73   :  { %1547 = vmatpush1.bf16.msra.mxu0 %v4376_v26  ;;  %v4410_v55 = vld [vmem:[#allocation5 + $0x364] ss:$16 sps:$4 sm:$0xff]   ;;  %v4413_v57 = vld [vmem:[#allocation5 + $0x360] ss:$16 sps:$4 sm:$0xff]  }
  0x74   :  { %1598 = vmatpush1.bf16.msra.mxu1 %v4377_v27  ;;  %1548 = vmatprep.subr.bf16.mxu0 %v4378_v28  ;;  %v4414_v58 = vld [vmem:[#allocation5 + $0x144] ss:$16 sps:$4 sm:$0xff]   ;;  %v4418_v60 = vld [vmem:[#allocation5 + $0x140] ss:$16 sps:$4 sm:$0xff]   ;;  %v5301_v28 = vpack.c.bf16 %v149_v24, %v149_v24  ;;  %v4515_v24 = vld [vmem:[#allocation5 + $0x4c] ss:$16 sps:$4 sm:$0xff]  }
  0x75   :  { %1599 = vmatprep.subr.bf16.mxu1 %v4380_v29  ;;  %1566 = vmatprep.mubr.bf16.mxu0 %v5283_v53  ;;  %v4416_v59 = vld [vmem:[#allocation5 + $0x344] ss:$16 sps:$4 sm:$0xff]   ;;  %v4419_v61 = vld [vmem:[#allocation5 + $0x340] ss:$16 sps:$4 sm:$0xff]   ;;  %v5303_v29 = vpack.c.bf16 %v147_v25, %v147_v25 }
  0x76   :  { %1617 = vmatprep.mubr.bf16.mxu1 %v5285_v54  ;;  %v4420_v62 = vld [vmem:[#allocation5 + $0x124] ss:$16 sps:$4 sm:$0xff]   ;;  %v4424_v0 = vld [vmem:[#allocation5 + $0x120] ss:$16 sps:$4 sm:$0xff]  }
  0x77   :  { %1549 = vmatpush1.bf16.msra.mxu0 %v4382_v30  ;;  %v4422_v63 = vld [vmem:[#allocation5 + $0x324] ss:$16 sps:$4 sm:$0xff]   ;;  %v4425_v1 = vld [vmem:[#allocation5 + $0x320] ss:$16 sps:$4 sm:$0xff]  }
  0x78   :  { %1600 = vmatpush1.bf16.msra.mxu1 %v4383_v31  ;;  %1550 = vmatprep.subr.bf16.mxu0 %v4384_v32  ;;  %v4426_v2 = vld [vmem:[#allocation5 + $0x104] ss:$16 sps:$4 sm:$0xff]   ;;  %v4430_v4 = vld [vmem:[#allocation5 + $0x100] ss:$16 sps:$4 sm:$0xff]  }
  0x79   :  { %1601 = vmatprep.subr.bf16.mxu1 %v4386_v33  ;;  %v4428_v3 = vld [vmem:[#allocation5 + $0x304] ss:$16 sps:$4 sm:$0xff]   ;;  %v4431_v5 = vld [vmem:[#allocation5 + $0x300] ss:$16 sps:$4 sm:$0xff]  }
  0x7a   :  { %v140_v7 = vld [vmem:[#allocation2 + $0x38] sm:$0xff]  ;;  %v142_v9 = vld [vmem:[#allocation2 + $0x48] sm:$0xff] }
  0x7b   :  { %1551 = vmatpush2.bf16.msra.mxu0 %v4388_v34  ;;  %v4434_v10 = vld [vmem:[#allocation5 + $0x4e4] ss:$16 sps:$4 sm:$0xff]   ;;  %v4432_v12 = vld [vmem:[#allocation5 + $0x4e0] ss:$16 sps:$4 sm:$0xff]   ;;  %v5289_v14 = vpack.c.bf16 %v140_v7, %v133_v6  ;;  %v5291_v15 = vpack.c.bf16 %v142_v9, %v135_v8  ;;  %v4497_v7 = vld [vmem:[#allocation5 + $0xac] ss:$16 sps:$4 sm:$0xff]  }
  0x7c   :  { %1602 = vmatpush2.bf16.msra.mxu1 %v4389_v35  ;;  %1552 = vmatprep.subr.bf16.mxu0 %v4390_v36  ;;  %v4437_v11 = vld [vmem:[#allocation5 + $0x6e4] ss:$16 sps:$4 sm:$0xff]   ;;  %v4435_v13 = vld [vmem:[#allocation5 + $0x6e0] ss:$16 sps:$4 sm:$0xff]  }
  0x7d   :  { %1603 = vmatprep.subr.bf16.mxu1 %v4392_v37  ;;  %v150_v16 = vld [vmem:[#allocation2 + $0x88] sm:$0xff]  ;;  %v148_v17 = vld [vmem:[#allocation2 + $0x78] sm:$0xff] }
  0x7e   :  { %v4440_v18 = vld [vmem:[#allocation5 + $0x4c4] ss:$16 sps:$4 sm:$0xff]   ;;  %v4438_v20 = vld [vmem:[#allocation5 + $0x4c0] ss:$16 sps:$4 sm:$0xff]   ;;  %v5293_v21 = vpack.c.bf16 %v150_v16, %v150_v16  ;;  %v5295_v22 = vpack.c.bf16 %v148_v17, %v148_v17  ;;  %v4501_v16 = vld [vmem:[#allocation5 + $0x88] ss:$16 sps:$4 sm:$0xff]  }
  0x7f   :  { %1553 = vmatpush2.bf16.msra.mxu0 %v4394_v38  ;;  %v4443_v19 = vld [vmem:[#allocation5 + $0x6c4] ss:$16 sps:$4 sm:$0xff]   ;;  %v4441_v23 = vld [vmem:[#allocation5 + $0x6c0] ss:$16 sps:$4 sm:$0xff]   ;;  %v5197_v38 = vmov 0  }
  0x80   :  { %1604 = vmatpush2.bf16.msra.mxu1 %v4395_v39  ;;  %1554 = vmatprep.subr.bf16.mxu0 %v4396_v40  ;;  %v4446_v26 = vld [vmem:[#allocation5 + $0x4a4] ss:$16 sps:$4 sm:$0xff]   ;;  %v4444_v30 = vld [vmem:[#allocation5 + $0x4a0] ss:$16 sps:$4 sm:$0xff]  }
  0x81   :  { %1605 = vmatprep.subr.bf16.mxu1 %v4398_v41  ;;  %v4449_v27 = vld [vmem:[#allocation5 + $0x6a4] ss:$16 sps:$4 sm:$0xff]   ;;  %v4447_v31 = vld [vmem:[#allocation5 + $0x6a0] ss:$16 sps:$4 sm:$0xff]  }
  0x82   :  { %v4452_v32 = vld [vmem:[#allocation5 + $0x484] ss:$16 sps:$4 sm:$0xff]   ;;  %v4450_v34 = vld [vmem:[#allocation5 + $0x480] ss:$16 sps:$4 sm:$0xff]  }
  0x83   :  { %1555 = vmatpush2.bf16.msra.mxu0 %v4400_v42  ;;  %v4455_v33 = vld [vmem:[#allocation5 + $0x684] ss:$16 sps:$4 sm:$0xff]   ;;  %v4453_v35 = vld [vmem:[#allocation5 + $0x680] ss:$16 sps:$4 sm:$0xff]  }
  0x84   :  { %1606 = vmatpush2.bf16.msra.mxu1 %v4401_v43  ;;  %1556 = vmatprep.subr.bf16.mxu0 %v4402_v44  ;;  %v4458_v36 = vld [vmem:[#allocation5 + $0x464] ss:$16 sps:$4 sm:$0xff]   ;;  %v4456_v39 = vld [vmem:[#allocation5 + $0x460] ss:$16 sps:$4 sm:$0xff]  }
  0x85   :  { %1607 = vmatprep.subr.bf16.mxu1 %v4404_v45  ;;  %v4461_v37 = vld [vmem:[#allocation5 + $0x664] ss:$16 sps:$4 sm:$0xff]   ;;  %v4459_v40 = vld [vmem:[#allocation5 + $0x660] ss:$16 sps:$4 sm:$0xff]  }
  0x86   :  { %v4464_v41 = vld [vmem:[#allocation5 + $0x444] ss:$16 sps:$4 sm:$0xff]   ;;  %v4462_v43 = vld [vmem:[#allocation5 + $0x440] ss:$16 sps:$4 sm:$0xff]  }
  0x87   :  { %1557 = vmatpush2.bf16.msra.mxu0 %v4406_v50  ;;  %v4467_v42 = vld [vmem:[#allocation5 + $0x644] ss:$16 sps:$4 sm:$0xff]   ;;  %v4465_v44 = vld [vmem:[#allocation5 + $0x640] ss:$16 sps:$4 sm:$0xff]  }
  0x88   :  { %1608 = vmatpush2.bf16.msra.mxu1 %v4407_v51  ;;  %1558 = vmatprep.subr.bf16.mxu0 %v4408_v52  ;;  %v4470_v45 = vld [vmem:[#allocation5 + $0x424] ss:$16 sps:$4 sm:$0xff]   ;;  %v4468_v47 = vld [vmem:[#allocation5 + $0x420] ss:$16 sps:$4 sm:$0xff]  }
  0x89   :  { %1609 = vmatprep.subr.bf16.mxu1 %v4410_v55  ;;  %v4473_v46 = vld [vmem:[#allocation5 + $0x624] ss:$16 sps:$4 sm:$0xff]   ;;  %v4471_v48 = vld [vmem:[#allocation5 + $0x620] ss:$16 sps:$4 sm:$0xff]   ;;  %v145_v55 = vld [vmem:[#allocation2 + $0x60] sm:$0xff] }
  0x8a   :  { %v4476_v49 = vld [vmem:[#allocation5 + $0x404] ss:$16 sps:$4 sm:$0xff]   ;;  %v4474_v51 = vld [vmem:[#allocation5 + $0x400] ss:$16 sps:$4 sm:$0xff]  }
  0x8b   :  { %1559 = vmatpush2.bf16.msra.mxu0 %v4412_v56  ;;  %v4479_v50 = vld [vmem:[#allocation5 + $0x604] ss:$16 sps:$4 sm:$0xff]   ;;  %v4477_v56 = vld [vmem:[#allocation5 + $0x600] ss:$16 sps:$4 sm:$0xff]  }
  0x8c   :  { %1610 = vmatpush2.bf16.msra.mxu1 %v4413_v57  ;;  %1560 = vmatprep.subr.bf16.mxu0 %v4414_v58  ;;  %v138_v52 = vld [vmem:[#allocation2 + $0x28] sm:$0xff]  ;;  %v139_v58 = vld [vmem:[#allocation2 + $0x30] sm:$0xff] }
  0x8d   :  { %1611 = vmatprep.subr.bf16.mxu1 %v4416_v59  ;;  %v5308_v57 = vpack.c.bf16 %v145_v55, %v138_v52  ;;  %v146_v59 = vld [vmem:[#allocation2 + $0x68] sm:$0xff]  ;;  %v4545_v52 = vld [vmem:[#allocation5 + $0x2ac] ss:$16 sps:$4 sm:$0xff]  }
  0x8e   :  { %v4494_v6 = vld [vmem:[#allocation5 + $0x5a4] ss:$16 sps:$4 sm:$0xff]   ;;  %v4492_v8 = vld [vmem:[#allocation5 + $0x5a0] ss:$16 sps:$4 sm:$0xff]  }
  0x8f   :  { %1561 = vmatpush2.bf16.msra.mxu0 %v4418_v60  ;;  %v4482_v60 = vld [vmem:[#allocation5 + $0x5e4] ss:$16 sps:$4 sm:$0xff]   ;;  %v4510_v25 = vld [vmem:[#allocation5 + $0x540] ss:$16 sps:$4 sm:$0xff]  }
  0x90   :  { %1612 = vmatpush2.bf16.msra.mxu1 %v4419_v61  ;;  %1562 = vmatprep.subr.bf16.mxu0 %v4420_v62  ;;  %v4485_v61 = vld [vmem:[#allocation5 + $0xec] ss:$16 sps:$4 sm:$0xff]   ;;  %v5311_v62 = vpack.c.bf16 %v146_v59, %v139_v58  ;;  %v4506_v17 = vld [vmem:[#allocation5 + $0x564] ss:$16 sps:$4 sm:$0xff]   ;;  %v4543_v58 = vld [vmem:[#allocation5 + $0x2a8] ss:$16 sps:$4 sm:$0xff]  }
  0x91   :  { %1613 = vmatprep.subr.bf16.mxu1 %v4422_v63  ;;  %v4480_v63 = vld [vmem:[#allocation5 + $0x5e0] ss:$16 sps:$4 sm:$0xff]   ;;  %v4548_v59 = vld [vmem:[#allocation5 + $0x18c] ss:$16 sps:$4 sm:$0xff]  }
  0x93   :  { %1563 = vmatpush2.bf16.msra.mxu0 %v4424_v0  ;;  %v4483_v0 = vld [vmem:[#allocation5 + $0xe8] ss:$16 sps:$4 sm:$0xff]  }
  0x94   :  { %1614 = vmatpush2.bf16.msra.mxu1 %v4425_v1  ;;  %1564 = vmatprep.subr.bf16.mxu0 %v4426_v2  ;;  %v4488_v1 = vld [vmem:[#allocation5 + $0x5c4] ss:$16 sps:$4 sm:$0xff]   ;;  %v4491_v2 = vld [vmem:[#allocation5 + $0xcc] ss:$16 sps:$4 sm:$0xff]  }
  0x95   :  { %1615 = vmatprep.subr.bf16.mxu1 %v4428_v3  ;;  %v4486_v3 = vld [vmem:[#allocation5 + $0x5c0] ss:$16 sps:$4 sm:$0xff]  }
  0x97   :  { %1565 = vmatpush2.bf16.msra.mxu0 %v4430_v4  ;;  %v4489_v4 = vld [vmem:[#allocation5 + $0xc8] ss:$16 sps:$4 sm:$0xff]  }
  0x98   :  { %1616 = vmatpush2.bf16.msra.mxu1 %v4431_v5  ;;  %1636 = vmatprep.subr.bf16.mxu0 %v4434_v10  ;;  %v153_v5 = vld [vmem:[#allocation2 + $0xa0] sm:$0xff] }
  0x99   :  { %1687 = vmatprep.subr.bf16.mxu1 %v4437_v11  ;;  %v5315_v9 = vpack.c.bf16 %v153_v5, %v153_v5  ;;  %v4495_v10 = vld [vmem:[#allocation5 + $0xa8] ss:$16 sps:$4 sm:$0xff]   ;;  %v4500_v11 = vld [vmem:[#allocation5 + $0x584] ss:$16 sps:$4 sm:$0xff]   ;;  %v4563_v5 = vld [vmem:[#allocation5 + $0x24c] ss:$16 sps:$4 sm:$0xff]  }
  0x9a   :  { %1567 = vmatmul.mubr.bf16.vlgmr.msra.gmra.mxu0 %v5289_v14 }
  0x9b   :  { %1618 = vmatmul.mubr.bf16.vlgmr.msra.gmra.mxu1 %v5291_v15  ;;  %1637 = vmatpush1.bf16.msra.mxu0 %v4432_v12  ;;  %v4503_v12 = vld [vmem:[#allocation5 + $0x8c] ss:$16 sps:$4 sm:$0xff]  }
  0x9c   :  { %1688 = vmatpush1.bf16.msra.mxu1 %v4435_v13  ;;  %1638 = vmatprep.subr.bf16.mxu0 %v4440_v18  ;;  %v4498_v13 = vld [vmem:[#allocation5 + $0x580] ss:$16 sps:$4 sm:$0xff]   ;;  %v4509_v18 = vld [vmem:[#allocation5 + $0x6c] ss:$16 sps:$4 sm:$0xff]  }
  0x9d   :  { %1689 = vmatprep.subr.bf16.mxu1 %v4443_v19  ;;  %1627 = vmatprep.mubr.bf16.mxu1 %v5293_v21  ;;  %v4504_v19 = vld [vmem:[#allocation5 + $0x560] ss:$16 sps:$4 sm:$0xff]  }
  0x9e   :  { %1576 = vmatprep.mubr.bf16.mxu0 %v5295_v22 }
  0x9f   :  { %1639 = vmatpush1.bf16.msra.mxu0 %v4438_v20  ;;  %v4507_v20 = vld [vmem:[#allocation5 + $0x68] ss:$16 sps:$4 sm:$0xff]  }
  0xa0   :  { %1690 = vmatpush1.bf16.msra.mxu1 %v4441_v23  ;;  %1640 = vmatprep.subr.bf16.mxu0 %v4446_v26  ;;  %v4512_v23 = vld [vmem:[#allocation5 + $0x544] ss:$16 sps:$4 sm:$0xff]   ;;  %v4513_v26 = vld [vmem:[#allocation5 + $0x48] ss:$16 sps:$4 sm:$0xff]  }
  0xa1   :  { %1691 = vmatprep.subr.bf16.mxu1 %v4449_v27  ;;  %v4518_v27 = vld [vmem:[#allocation5 + $0x524] ss:$16 sps:$4 sm:$0xff]  }
  0xa2   :  { %1577 = vmatmul.mubr.bf16.gmra.mxu0 %v5303_v29 }
  0xa3   :  { %1628 = vmatmul.mubr.bf16.gmra.mxu1 %v5301_v28  ;;  %1641 = vmatpush1.bf16.msra.mxu0 %v4444_v30  ;;  %v4521_v30 = vld [vmem:[#allocation5 + $0x2c] ss:$16 sps:$4 sm:$0xff]  }
  0xa4   :  { %1692 = vmatpush1.bf16.msra.mxu1 %v4447_v31  ;;  %1642 = vmatprep.subr.bf16.mxu0 %v4452_v32  ;;  %v4516_v31 = vld [vmem:[#allocation5 + $0x520] ss:$16 sps:$4 sm:$0xff]   ;;  %v4524_v32 = vld [vmem:[#allocation5 + $0x504] ss:$16 sps:$4 sm:$0xff]  }
  0xa5   :  { %1693 = vmatprep.subr.bf16.mxu1 %v4455_v33  ;;  %1719 = vmatprep.mubr.bf16.mxu1 %v5197_v38  ;;  %v4527_v33 = vld [vmem:[#allocation5 + $0xc] ss:$16 sps:$4 sm:$0xff]  }
  0xa6   :  { %1668 = vmatprep.mubr.bf16.mxu0 %v5308_v57 }
  0xa7   :  { %1643 = vmatpush1.bf16.msra.mxu0 %v4450_v34  ;;  %v4522_v34 = vld [vmem:[#allocation5 + $0x500] ss:$16 sps:$4 sm:$0xff]  }
  0xa8   :  { %1694 = vmatpush1.bf16.msra.mxu1 %v4453_v35  ;;  %1644 = vmatprep.subr.bf16.mxu0 %v4458_v36  ;;  %v4525_v35 = vld [vmem:[#allocation5 + $0x8] ss:$16 sps:$4 sm:$0xff]  }
  0xa9   :  { %1695 = vmatprep.subr.bf16.mxu1 %v4461_v37  ;;  %v137_v36 = vld [vmem:[#allocation2 + $0x20] sm:$0xff]  ;;  %v144_v37 = vld [vmem:[#allocation2 + $0x58] sm:$0xff] }
  0xab   :  { %1645 = vmatpush1.bf16.msra.mxu0 %v4456_v39  ;;  %v4530_v39 = vld [vmem:[#allocation5 + $0x1ec] ss:$16 sps:$4 sm:$0xff]  }
  0xac   :  { %1696 = vmatpush1.bf16.msra.mxu1 %v4459_v40  ;;  %1646 = vmatprep.subr.bf16.mxu0 %v4464_v41  ;;  %v4533_v40 = vld [vmem:[#allocation5 + $0x2ec] ss:$16 sps:$4 sm:$0xff]   ;;  %v4528_v41 = vld [vmem:[#allocation5 + $0x1e8] ss:$16 sps:$4 sm:$0xff]  }
  0xad   :  { %1697 = vmatprep.subr.bf16.mxu1 %v4467_v42  ;;  %v5319_v42 = vpack.c.bf16 %v144_v37, %v137_v36  ;;  %v4602_v36 = vld [vmem:[#allocation5 + $0x36c] ss:$16 sps:$4 sm:$0xff]  }
  0xae   :  { %v4605_v37 = vld [vmem:[#allocation5 + $0x46c] ss:$16 sps:$4 sm:$0xff]  }
  0xaf   :  { %1647 = vmatpush1.bf16.msra.mxu0 %v4462_v43  ;;  %v152_v43 = vld [vmem:[#allocation2 + $0x98] sm:$0xff] }
  0xb0   :  { %1698 = vmatpush1.bf16.msra.mxu1 %v4465_v44  ;;  %1648 = vmatprep.subr.bf16.mxu0 %v4470_v45  ;;  %v4531_v44 = vld [vmem:[#allocation5 + $0x2e8] ss:$16 sps:$4 sm:$0xff]   ;;  %v4536_v45 = vld [vmem:[#allocation5 + $0x1cc] ss:$16 sps:$4 sm:$0xff]  }
  0xb1   :  { %1699 = vmatprep.subr.bf16.mxu1 %v4473_v46  ;;  %v4539_v46 = vld [vmem:[#allocation5 + $0x2cc] ss:$16 sps:$4 sm:$0xff]  }
  0xb3   :  { %1649 = vmatpush1.bf16.msra.mxu0 %v4468_v47  ;;  %v4534_v47 = vld [vmem:[#allocation5 + $0x1c8] ss:$16 sps:$4 sm:$0xff]  }
  0xb4   :  { %1700 = vmatpush1.bf16.msra.mxu1 %v4471_v48  ;;  %1650 = vmatprep.subr.bf16.mxu0 %v4476_v49  ;;  %v5321_v48 = vpack.c.bf16 %v152_v43, %v152_v43  ;;  %v4537_v49 = vld [vmem:[#allocation5 + $0x2c8] ss:$16 sps:$4 sm:$0xff]  }
  0xb5   :  { %1701 = vmatprep.subr.bf16.mxu1 %v4479_v50  ;;  %v151_v50 = vld [vmem:[#allocation2 + $0x90] sm:$0xff] }
  0xb6   :  { %v5325_v55 = vpack.c.bf16 %v151_v50, %v151_v50  ;;  %v4606_v43 = vld [vmem:[#allocation5 + $0x348] ss:$16 sps:$4 sm:$0xff]   ;;  %v4623_v50 = vld [vmem:[#allocation5 + $0x40c] ss:$16 sps:$4 sm:$0xff]  }
  0xb7   :  { %1651 = vmatpush1.bf16.msra.mxu0 %v4474_v51  ;;  %v4542_v51 = vld [vmem:[#allocation5 + $0x1ac] ss:$16 sps:$4 sm:$0xff]  }
  0xb8   :  { %1702 = vmatpush1.bf16.msra.mxu1 %v4477_v56  ;;  %1652 = vmatprep.subr.bf16.mxu0 %v4482_v60  ;;  %v4540_v56 = vld [vmem:[#allocation5 + $0x1a8] ss:$16 sps:$4 sm:$0xff]   ;;  %v4551_v60 = vld [vmem:[#allocation5 + $0x28c] ss:$16 sps:$4 sm:$0xff]  }
  0xb9   :  { %1738 = vmatprep.subr.bf16.mxu1 %v4485_v61  ;;  %v4546_v61 = vld [vmem:[#allocation5 + $0x188] ss:$16 sps:$4 sm:$0xff]  }
  0xbb   :  { %1720 = vmatmul.mubr.bf16.vlgmr.msra.gmra.mxu1 %v5311_v62  ;;  %1653 = vmatpush2.bf16.msra.mxu0 %v4480_v63  ;;  %v4549_v63 = vld [vmem:[#allocation5 + $0x288] ss:$16 sps:$4 sm:$0xff]  }
  0xbc   :  { %1739 = vmatpush1.bf16.msra.mxu1 %v4483_v0  ;;  %1654 = vmatprep.subr.bf16.mxu0 %v4488_v1  ;;  %v4554_v0 = vld [vmem:[#allocation5 + $0x16c] ss:$16 sps:$4 sm:$0xff]  }
  0xbd   :  { %1740 = vmatprep.subr.bf16.mxu1 %v4491_v2  ;;  %1729 = vmatprep.mubr.bf16.mxu1 %v5197_v38  ;;  %v4557_v1 = vld [vmem:[#allocation5 + $0x26c] ss:$16 sps:$4 sm:$0xff]   ;;  %v4552_v2 = vld [vmem:[#allocation5 + $0x168] ss:$16 sps:$4 sm:$0xff]  }
  0xbf   :  { %1655 = vmatpush2.bf16.msra.mxu0 %v4486_v3  ;;  %v4555_v3 = vld [vmem:[#allocation5 + $0x268] ss:$16 sps:$4 sm:$0xff]  }
  0xc0   :  { %1741 = vmatpush1.bf16.msra.mxu1 %v4489_v4  ;;  %1656 = vmatprep.subr.bf16.mxu0 %v4494_v6  ;;  %v4560_v4 = vld [vmem:[#allocation5 + $0x14c] ss:$16 sps:$4 sm:$0xff]   ;;  %v4558_v6 = vld [vmem:[#allocation5 + $0x148] ss:$16 sps:$4 sm:$0xff]  }
  0xc1   :  { %1742 = vmatprep.subr.bf16.mxu1 %v4497_v7  ;;  %v4561_v7 = vld [vmem:[#allocation5 + $0x248] ss:$16 sps:$4 sm:$0xff]  }
  0xc3   :  { %1730 = vmatmul.mubr.bf16.gmra.mxu1 %v5315_v9  ;;  %1657 = vmatpush2.bf16.msra.mxu0 %v4492_v8  ;;  %v4566_v8 = vld [vmem:[#allocation5 + $0x12c] ss:$16 sps:$4 sm:$0xff]  }
  0xc4   :  { %1743 = vmatpush1.bf16.msra.mxu1 %v4495_v10  ;;  %1658 = vmatprep.subr.bf16.mxu0 %v4500_v11  ;;  %v4569_v10 = vld [vmem:[#allocation5 + $0x22c] ss:$16 sps:$4 sm:$0xff]   ;;  %v4564_v11 = vld [vmem:[#allocation5 + $0x128] ss:$16 sps:$4 sm:$0xff]  }
  0xc5   :  { %1744 = vmatprep.subr.bf16.mxu1 %v4503_v12  ;;  %1770 = vmatprep.mubr.bf16.mxu1 %v5283_v53  ;;  %v4519_v53 = vld [vmem:[#allocation5 + $0x28] ss:$16 sps:$4 sm:$0xff]   ;;  %v4572_v12 = vld [vmem:[#allocation5 + $0x10c] ss:$16 sps:$4 sm:$0xff]  }
  0xc7   :  { %1659 = vmatpush2.bf16.msra.mxu0 %v4498_v13  ;;  %v4575_v13 = vld [vmem:[#allocation5 + $0x20c] ss:$16 sps:$4 sm:$0xff]  }
  0xc8   :  { %1745 = vmatpush1.bf16.msra.mxu1 %v4501_v16  ;;  %1660 = vmatprep.subr.bf16.mxu0 %v4506_v17  ;;  %v4570_v16 = vld [vmem:[#allocation5 + $0x108] ss:$16 sps:$4 sm:$0xff]  }
  0xc9   :  { %1746 = vmatprep.subr.bf16.mxu1 %v4509_v18  ;;  %v4573_v17 = vld [vmem:[#allocation5 + $0x208] ss:$16 sps:$4 sm:$0xff]   ;;  %v4578_v18 = vld [vmem:[#allocation5 + $0x3ec] ss:$16 sps:$4 sm:$0xff]  }
  0xcb   :  { %1661 = vmatpush2.bf16.msra.mxu0 %v4504_v19  ;;  %v4581_v19 = vld [vmem:[#allocation5 + $0x4ec] ss:$16 sps:$4 sm:$0xff]  }
  0xcc   :  { %1747 = vmatpush1.bf16.msra.mxu1 %v4507_v20  ;;  %1662 = vmatprep.subr.bf16.mxu0 %v4512_v23  ;;  %v4576_v20 = vld [vmem:[#allocation5 + $0x3e8] ss:$16 sps:$4 sm:$0xff]  }
  0xcd   :  { %1748 = vmatprep.subr.bf16.mxu1 %v4515_v24  ;;  %v4579_v23 = vld [vmem:[#allocation5 + $0x4e8] ss:$16 sps:$4 sm:$0xff]   ;;  %v4584_v24 = vld [vmem:[#allocation5 + $0x3cc] ss:$16 sps:$4 sm:$0xff]  }
  0xcf   :  { %1663 = vmatpush2.bf16.msra.mxu0 %v4510_v25  ;;  %v4587_v25 = vld [vmem:[#allocation5 + $0x4cc] ss:$16 sps:$4 sm:$0xff]  }
  0xd0   :  { %1749 = vmatpush1.bf16.msra.mxu1 %v4513_v26  ;;  %1664 = vmatprep.subr.bf16.mxu0 %v4518_v27  ;;  %v4582_v26 = vld [vmem:[#allocation5 + $0x3c8] ss:$16 sps:$4 sm:$0xff]  }
  0xd1   :  { %1750 = vmatprep.subr.bf16.mxu1 %v4521_v30  ;;  %v4585_v27 = vld [vmem:[#allocation5 + $0x4c8] ss:$16 sps:$4 sm:$0xff]   ;;  %v4590_v30 = vld [vmem:[#allocation5 + $0x3ac] ss:$16 sps:$4 sm:$0xff]  }
  0xd3   :  { %1665 = vmatpush2.bf16.msra.mxu0 %v4516_v31  ;;  %v4593_v31 = vld [vmem:[#allocation5 + $0x4ac] ss:$16 sps:$4 sm:$0xff]  }
  0xd4   :  { %1751 = vmatpush1.bf16.msra.mxu1 %v4519_v53  ;;  %1666 = vmatprep.subr.bf16.mxu0 %v4524_v32  ;;  %v4588_v53 = vld [vmem:[#allocation5 + $0x3a8] ss:$16 sps:$4 sm:$0xff]  }
  0xd5   :  { %1752 = vmatprep.subr.bf16.mxu1 %v4527_v33  ;;  %v4591_v32 = vld [vmem:[#allocation5 + $0x4a8] ss:$16 sps:$4 sm:$0xff]   ;;  %v4596_v33 = vld [vmem:[#allocation5 + $0x38c] ss:$16 sps:$4 sm:$0xff]  }
  0xd7   :  { %1667 = vmatpush2.bf16.msra.mxu0 %v4522_v34  ;;  %v4599_v34 = vld [vmem:[#allocation5 + $0x48c] ss:$16 sps:$4 sm:$0xff]  }
  0xd8   :  { %1753 = vmatpush1.bf16.msra.mxu1 %v4525_v35  ;;  %1789 = vmatprep.subr.bf16.mxu0 %v4533_v40  ;;  %v4594_v35 = vld [vmem:[#allocation5 + $0x388] ss:$16 sps:$4 sm:$0xff]  }
  0xd9   :  { %1754 = vmatprep.subr.bf16.mxu1 %v4530_v39  ;;  %v4600_v39 = vld [vmem:[#allocation5 + $0x368] ss:$16 sps:$4 sm:$0xff]  }
  0xda   :  { %1669 = vmatmul.mubr.bf16.vlgmr.msra.gmra.mxu0 %v5319_v42  ;;  %v4603_v40 = vld [vmem:[#allocation5 + $0x468] ss:$16 sps:$4 sm:$0xff]  }
  0xdb   :  { %1790 = vmatpush1.bf16.msra.mxu0 %v4531_v44  ;;  %1678 = vmatprep.mubr.bf16.mxu0 %v5321_v48  ;;  %v4609_v44 = vld [vmem:[#allocation5 + $0x448] ss:$16 sps:$4 sm:$0xff]  }
  0xdc   :  { %1755 = vmatpush2.bf16.msra.mxu1 %v4528_v41  ;;  %1791 = vmatprep.subr.bf16.mxu0 %v4539_v46  ;;  %v4611_v41 = vld [vmem:[#allocation5 + $0x44c] ss:$16 sps:$4 sm:$0xff]   ;;  %v4612_v46 = vld [vmem:[#allocation5 + $0x328] ss:$16 sps:$4 sm:$0xff]  }
  0xdd   :  { %1756 = vmatprep.subr.bf16.mxu1 %v4536_v45  ;;  %v4617_v45 = vld [vmem:[#allocation5 + $0x42c] ss:$16 sps:$4 sm:$0xff]  }
  0xdf   :  { %1792 = vmatpush1.bf16.msra.mxu0 %v4537_v49  ;;  %v4620_v49 = vld [vmem:[#allocation5 + $0x30c] ss:$16 sps:$4 sm:$0xff]  }
  0xe0   :  { %1757 = vmatpush2.bf16.msra.mxu1 %v4534_v47  ;;  %1793 = vmatprep.subr.bf16.mxu0 %v4545_v52  ;;  %v4615_v47 = vld [vmem:[#allocation5 + $0x428] ss:$16 sps:$4 sm:$0xff]   ;;  %v4626_v52 = vld [vmem:[#allocation5 + $0x5ec] ss:$16 sps:$4 sm:$0xff]  }
  0xe1   :  { %1758 = vmatprep.subr.bf16.mxu1 %v4542_v51  ;;  %v4621_v51 = vld [vmem:[#allocation5 + $0x408] ss:$16 sps:$4 sm:$0xff]  }
  0xe2   :  { %1679 = vmatmul.mubr.bf16.gmra.mxu0 %v5325_v55 }
  0xe3   :  { %1794 = vmatpush1.bf16.msra.mxu0 %v4543_v58  ;;  %1821 = vmatprep.mubr.bf16.mxu0 %v5285_v54  ;;  %v4567_v54 = vld [vmem:[#allocation5 + $0x228] ss:$16 sps:$4 sm:$0xff]  }
  0xe4   :  { %1759 = vmatpush2.bf16.msra.mxu1 %v4540_v56  ;;  %1795 = vmatprep.subr.bf16.mxu0 %v4551_v60  ;;  %v4629_v56 = vld [vmem:[#allocation5 + $0x6ec] ss:$16 sps:$4 sm:$0xff]   ;;  %v4624_v58 = vld [vmem:[#allocation5 + $0x5e8] ss:$16 sps:$4 sm:$0xff]  }
  0xe5   :  { %1760 = vmatprep.subr.bf16.mxu1 %v4548_v59  ;;  %v4627_v59 = vld [vmem:[#allocation5 + $0x6e8] ss:$16 sps:$4 sm:$0xff]   ;;  %v4632_v60 = vld [vmem:[#allocation5 + $0x5cc] ss:$16 sps:$4 sm:$0xff]  }
  0xe7   :  { %1796 = vmatpush1.bf16.msra.mxu0 %v4549_v63  ;;  %v4630_v63 = vld [vmem:[#allocation5 + $0x5c8] ss:$16 sps:$4 sm:$0xff]  }
  0xe8   :  { %1761 = vmatpush2.bf16.msra.mxu1 %v4546_v61  ;;  %1797 = vmatprep.subr.bf16.mxu0 %v4557_v1  ;;  %v4635_v61 = vld [vmem:[#allocation5 + $0x6cc] ss:$16 sps:$4 sm:$0xff]  }
  0xe9   :  { %1762 = vmatprep.subr.bf16.mxu1 %v4554_v0  ;;  %v4633_v0 = vld [vmem:[#allocation5 + $0x6c8] ss:$16 sps:$4 sm:$0xff]   ;;  %v4638_v1 = vld [vmem:[#allocation5 + $0x5ac] ss:$16 sps:$4 sm:$0xff]  }
  0xeb   :  { %1798 = vmatpush1.bf16.msra.mxu0 %v4555_v3  ;;  %v4636_v3 = vld [vmem:[#allocation5 + $0x5a8] ss:$16 sps:$4 sm:$0xff]  }
  0xec   :  { %1763 = vmatpush2.bf16.msra.mxu1 %v4552_v2  ;;  %1799 = vmatprep.subr.bf16.mxu0 %v4563_v5  ;;  %v4641_v2 = vld [vmem:[#allocation5 + $0x6ac] ss:$16 sps:$4 sm:$0xff]  }
  0xed   :  { %1764 = vmatprep.subr.bf16.mxu1 %v4560_v4  ;;  %v4639_v4 = vld [vmem:[#allocation5 + $0x6a8] ss:$16 sps:$4 sm:$0xff]   ;;  %v4644_v5 = vld [vmem:[#allocation5 + $0x58c] ss:$16 sps:$4 sm:$0xff]  }
  0xef   :  { %1800 = vmatpush1.bf16.msra.mxu0 %v4561_v7  ;;  %v4642_v7 = vld [vmem:[#allocation5 + $0x588] ss:$16 sps:$4 sm:$0xff]  }
  0xf0   :  { %1765 = vmatpush2.bf16.msra.mxu1 %v4558_v6  ;;  %1801 = vmatprep.subr.bf16.mxu0 %v4569_v10  ;;  %v4647_v6 = vld [vmem:[#allocation5 + $0x68c] ss:$16 sps:$4 sm:$0xff]  }
  0xf1   :  { %1766 = vmatprep.subr.bf16.mxu1 %v4566_v8  ;;  %v4645_v8 = vld [vmem:[#allocation5 + $0x688] ss:$16 sps:$4 sm:$0xff]   ;;  %v4650_v10 = vld [vmem:[#allocation5 + $0x56c] ss:$16 sps:$4 sm:$0xff]  }
  0xf3   :  { %1802 = vmatpush1.bf16.msra.mxu0 %v4567_v54  ;;  %v4651_v54 = vld [vmem:[#allocation5 + $0x668] ss:$16 sps:$4 sm:$0xff]  }
  0xf4   :  { %1767 = vmatpush2.bf16.msra.mxu1 %v4564_v11  ;;  %1803 = vmatprep.subr.bf16.mxu0 %v4575_v13  ;;  %v4648_v11 = vld [vmem:[#allocation5 + $0x568] ss:$16 sps:$4 sm:$0xff]  }
  0xf5   :  { %1768 = vmatprep.subr.bf16.mxu1 %v4572_v12  ;;  %v4659_v12 = vld [vmem:[#allocation5 + $0x64c] ss:$16 sps:$4 sm:$0xff]   ;;  %v4654_v13 = vld [vmem:[#allocation5 + $0x548] ss:$16 sps:$4 sm:$0xff]  }
  0xf7   :  { %1804 = vmatpush1.bf16.msra.mxu0 %v4573_v17  ;;  %v4662_v17 = vld [vmem:[#allocation5 + $0x52c] ss:$16 sps:$4 sm:$0xff]  }
  0xf8   :  { %1769 = vmatpush2.bf16.msra.mxu1 %v4570_v16  ;;  %1805 = vmatprep.subr.bf16.mxu0 %v4578_v18  ;;  %v4657_v16 = vld [vmem:[#allocation5 + $0x648] ss:$16 sps:$4 sm:$0xff]   ;;  %v4665_v18 = vld [vmem:[#allocation5 + $0x62c] ss:$16 sps:$4 sm:$0xff]  }
  0xf9   :  { %1840 = vmatprep.subr.bf16.mxu1 %v4581_v19  ;;  %v4663_v19 = vld [vmem:[#allocation5 + $0x628] ss:$16 sps:$4 sm:$0xff]  }
  0xfb   :  { %1771 = vmatmul.mubr.bf16.vlgmr.msra.gmra.mxu1 %v5289_v14  ;;  %1806 = vmatpush2.bf16.msra.mxu0 %v4576_v20  ;;  %v4597_v14 = vld [vmem:[#allocation5 + $0x488] ss:$16 sps:$4 sm:$0xff]   ;;  %v4668_v20 = vld [vmem:[#allocation5 + $0x50c] ss:$16 sps:$4 sm:$0xff]  }
  0xfc   :  { %1841 = vmatpush1.bf16.msra.mxu1 %v4579_v23  ;;  %1807 = vmatprep.subr.bf16.mxu0 %v4584_v24  ;;  %v4671_v23 = vld [vmem:[#allocation5 + $0x60c] ss:$16 sps:$4 sm:$0xff]   ;;  %v4666_v24 = vld [vmem:[#allocation5 + $0x508] ss:$16 sps:$4 sm:$0xff]  }
  0xfd   :  { %1842 = vmatprep.subr.bf16.mxu1 %v4587_v25  ;;  %1780 = vmatprep.mubr.bf16.mxu1 %v5295_v22  ;;  %v4608_v22 = vld [vmem:[#allocation5 + $0x34c] ss:$16 sps:$4 sm:$0xff]   ;;  %v4669_v25 = vld [vmem:[#allocation5 + $0x608] ss:$16 sps:$4 sm:$0xff]  }
  0xff   :  { %1808 = vmatpush2.bf16.msra.mxu0 %v4582_v26  ;;  %v4674_v26 = vld [vmem:[#allocation8 + $0x74] ss:$8 sps:$4 sm:$0xff]  }
 0x100   :  { %1843 = vmatpush1.bf16.msra.mxu1 %v4585_v27  ;;  %1809 = vmatprep.subr.bf16.mxu0 %v4590_v30  ;;  %v4672_v27 = vld [vmem:[#allocation8 + $0x70] ss:$8 sps:$4 sm:$0xff]   ;;  %v4677_v30 = vld [vmem:[#allocation8 + $0x64] ss:$8 sps:$4 sm:$0xff]  }
 0x101   :  { %1844 = vmatprep.subr.bf16.mxu1 %v4593_v31  ;;  %v4675_v31 = vld [vmem:[#allocation8 + $0x60] ss:$8 sps:$4 sm:$0xff]  }
 0x103   :  { %1781 = vmatmul.mubr.bf16.gmra.mxu1 %v5303_v29  ;;  %1810 = vmatpush2.bf16.msra.mxu0 %v4588_v53  ;;  %v4614_v29 = vld [vmem:[#allocation5 + $0x32c] ss:$16 sps:$4 sm:$0xff]   ;;  %v4680_v53 = vld [vmem:[#allocation8 + $0x54] ss:$8 sps:$4 sm:$0xff]  }
 0x104   :  { %1845 = vmatpush1.bf16.msra.mxu1 %v4591_v32  ;;  %1811 = vmatprep.subr.bf16.mxu0 %v4596_v33  ;;  %v4678_v32 = vld [vmem:[#allocation8 + $0x50] ss:$8 sps:$4 sm:$0xff]   ;;  %v4683_v33 = vld [vmem:[#allocation8 + $0x44] ss:$8 sps:$4 sm:$0xff]  }
 0x105   :  { %1846 = vmatprep.subr.bf16.mxu1 %v4599_v34  ;;  %1872 = vmatprep.mubr.bf16.mxu1 %v5308_v57  ;;  %v4618_v57 = vld [vmem:[#allocation5 + $0x308] ss:$16 sps:$4 sm:$0xff]   ;;  %v4720_v34 = vld [vmem:[#allocation8 + $0x170] ss:$8 sps:$4 sm:$0xff]  }
 0x107   :  { %1812 = vmatpush2.bf16.msra.mxu0 %v4594_v35  ;;  %v4722_v35 = vld [vmem:[#allocation8 + $0x174] ss:$8 sps:$4 sm:$0xff]  }
 0x108   :  { %1847 = vmatpush1.bf16.msra.mxu1 %v4597_v14  ;;  %1813 = vmatprep.subr.bf16.mxu0 %v4602_v36  ;;  %v4686_v14 = vld [vmem:[#allocation8 + $0x34] ss:$8 sps:$4 sm:$0xff]  }
 0x109   :  { %1848 = vmatprep.subr.bf16.mxu1 %v4605_v37  ;;  %v4728_v36 = vld [vmem:[#allocation8 + $0x154] ss:$8 sps:$4 sm:$0xff]   ;;  %v4684_v37 = vld [vmem:[#allocation8 + $0x30] ss:$8 sps:$4 sm:$0xff]  }
 0x10b   :  { %1814 = vmatpush2.bf16.msra.mxu0 %v4600_v39  ;;  %v4726_v39 = vld [vmem:[#allocation8 + $0x150] ss:$8 sps:$4 sm:$0xff]  }
 0x10c   :  { %1849 = vmatpush1.bf16.msra.mxu1 %v4603_v40  ;;  %1815 = vmatprep.subr.bf16.mxu0 %v4608_v22  ;;  %v4689_v40 = vld [vmem:[#allocation8 + $0x24] ss:$8 sps:$4 sm:$0xff]  }
 0x10d   :  { %1850 = vmatprep.subr.bf16.mxu1 %v4611_v41  ;;  %v4731_v22 = vld [vmem:[#allocation8 + $0x144] ss:$8 sps:$4 sm:$0xff]   ;;  %v394_v41 = vlaneseq }
 0x10f   :  { %1816 = vmatpush2.bf16.msra.mxu0 %v4606_v43  ;;  %v4692_v43 = vld [vmem:[#allocation8 + $0x14] ss:$8 sps:$4 sm:$0xff]  }
 0x110   :  { %1851 = vmatpush1.bf16.msra.mxu1 %v4609_v44  ;;  %1817 = vmatprep.subr.bf16.mxu0 %v4614_v29  ;;  %v4690_v44 = vld [vmem:[#allocation8 + $0x10] ss:$8 sps:$4 sm:$0xff]   ;;  %v5343_v29 = vshrl.u32 %v394_v41, 7  ;;  %v4753_v41 = vld [vmem:[#allocation8 + $0x1c0] ss:$8 sps:$4 sm:$0xff]  }
 0x111   :  { %1852 = vmatprep.subr.bf16.mxu1 %v4617_v45  ;;  %v4695_v45 = vld [vmem:[#allocation8 + $0x4] ss:$8 sps:$4 sm:$0xff]  }
 0x113   :  { %1818 = vmatpush2.bf16.msra.mxu0 %v4612_v46  ;;  %v5346_v46 = vsub.s32 0, %v5343_v29 }
 0x114   :  { %1853 = vmatpush1.bf16.msra.mxu1 %v4615_v47  ;;  %1819 = vmatprep.subr.bf16.mxu0 %v4620_v49  ;;  %v5348_v47 = vld [vmem:[#allocation7] sm:$0xf]  ;;  %v4693_v49 = vld [vmem:[#allocation8] ss:$8 sps:$4 sm:$0xff]  }
 0x115   :  { %1854 = vmatprep.subr.bf16.mxu1 %v4623_v50  ;;  %v5351_v50 = vsub.s32 1, %v5343_v29 }
 0x117   :  { %1820 = vmatpush2.bf16.msra.mxu0 %v4618_v57  ;;  %v4698_v57 = vld [vmem:[#allocation8 + $0xf4] ss:$8 sps:$4 sm:$0xff]  }
 0x118   :  { %1855 = vmatpush1.bf16.msra.mxu1 %v4621_v51  ;;  %1891 = vmatprep.subr.bf16.mxu0 %v4629_v56  ;;  %v5355_v51 = vrot.slane %v5348_v47, %v5346_v46  ;;  %v4734_v56 = vld [vmem:[#allocation8 + $0x134] ss:$8 sps:$4 sm:$0xff]  }
 0x119   :  { %1856 = vmatprep.subr.bf16.mxu1 %v4626_v52  ;;  %v4696_v52 = vld [vmem:[#allocation8 + $0xf0] ss:$8 sps:$4 sm:$0xff]  }
 0x11a   :  { %1822 = vmatmul.mubr.bf16.vlgmr.msra.gmra.mxu0 %v5291_v15  ;;  %v4653_v15 = vld [vmem:[#allocation5 + $0x66c] ss:$16 sps:$4 sm:$0xff]  }
 0x11b   :  { %1892 = vmatpush1.bf16.msra.mxu0 %v4627_v59  ;;  %1831 = vmatprep.mubr.bf16.mxu0 %v5293_v21  ;;  %v4656_v21 = vld [vmem:[#allocation5 + $0x54c] ss:$16 sps:$4 sm:$0xff]   ;;  %v4701_v59 = vld [vmem:[#allocation8 + $0xe4] ss:$8 sps:$4 sm:$0xff]  }
 0x11c   :  { %1857 = vmatpush2.bf16.msra.mxu1 %v4624_v58  ;;  %1893 = vmatprep.subr.bf16.mxu0 %v4635_v61  ;;  %v5359_v58 = vrot.slane %v5348_v47, %v5351_v50 }
 0x11d   :  { %1858 = vmatprep.subr.bf16.mxu1 %v4632_v60  ;;  %v4732_v60 = vld [vmem:[#allocation8 + $0x130] ss:$8 sps:$4 sm:$0xff]  }
 0x11f   :  { %1894 = vmatpush1.bf16.msra.mxu0 %v4633_v0 }
 0x120   :  { %1859 = vmatpush2.bf16.msra.mxu1 %v4630_v63  ;;  %1895 = vmatprep.subr.bf16.mxu0 %v4641_v2 }
 0x121   :  { %1860 = vmatprep.subr.bf16.mxu1 %v4638_v1 }
 0x122   :  { %1832 = vmatmul.mubr.bf16.gmra.mxu0 %v5301_v28  ;;  %v4660_v28 = vld [vmem:[#allocation5 + $0x528] ss:$16 sps:$4 sm:$0xff]  }
 0x123   :  { %1896 = vmatpush1.bf16.msra.mxu0 %v4639_v4  ;;  %1923 = vmatprep.mubr.bf16.mxu0 %v5197_v38  ;;  %v4737_v4 = vld [vmem:[#allocation8 + $0x124] ss:$8 sps:$4 sm:$0xff]  }
 0x124   :  { %1861 = vmatpush2.bf16.msra.mxu1 %v4636_v3  ;;  %1897 = vmatprep.subr.bf16.mxu0 %v4647_v6  ;;  %v4699_v3 = vld [vmem:[#allocation8 + $0xe0] ss:$8 sps:$4 sm:$0xff]  }
 0x125   :  { %1862 = vmatprep.subr.bf16.mxu1 %v4644_v5 }
 0x127   :  { %1898 = vmatpush1.bf16.msra.mxu0 %v4645_v8  ;;  %v4735_v8 = vld [vmem:[#allocation8 + $0x120] ss:$8 sps:$4 sm:$0xff]  }
 0x128   :  { %1863 = vmatpush2.bf16.msra.mxu1 %v4642_v7  ;;  %1899 = vmatprep.subr.bf16.mxu0 %v4653_v15  ;;  %v4704_v7 = vld [vmem:[#allocation8 + $0xd4] ss:$8 sps:$4 sm:$0xff]  }
 0x129   :  { %1864 = vmatprep.subr.bf16.mxu1 %v4650_v10 }
 0x12b   :  { %1900 = vmatpush1.bf16.msra.mxu0 %v4651_v54 }
 0x12c   :  { %1865 = vmatpush2.bf16.msra.mxu1 %v4648_v11  ;;  %1901 = vmatprep.subr.bf16.mxu0 %v4659_v12  ;;  %v4702_v12 = vld [vmem:[#allocation8 + $0xd0] ss:$8 sps:$4 sm:$0xff]  }
 0x12d   :  { %1866 = vmatprep.subr.bf16.mxu1 %v4656_v21 }
 0x12f   :  { %1902 = vmatpush1.bf16.msra.mxu0 %v4657_v16  ;;  %v4707_v16 = vld [vmem:[#allocation8 + $0xc4] ss:$8 sps:$4 sm:$0xff]  }
 0x130   :  { %1867 = vmatpush2.bf16.msra.mxu1 %v4654_v13  ;;  %1903 = vmatprep.subr.bf16.mxu0 %v4665_v18  ;;  %v4740_v13 = vld [vmem:[#allocation8 + $0x114] ss:$8 sps:$4 sm:$0xff]   ;;  %v4743_v18 = vld [vmem:[#allocation8 + $0x104] ss:$8 sps:$4 sm:$0xff]  }
 0x131   :  { %1868 = vmatprep.subr.bf16.mxu1 %v4662_v17  ;;  %v4738_v17 = vld [vmem:[#allocation8 + $0x110] ss:$8 sps:$4 sm:$0xff]  }
 0x133   :  { %1904 = vmatpush1.bf16.msra.mxu0 %v4663_v19 }
 0x134   :  { %1869 = vmatpush2.bf16.msra.mxu1 %v4660_v28  ;;  %1905 = vmatprep.subr.bf16.mxu0 %v4671_v23  ;;  %v4741_v23 = vld [vmem:[#allocation8 + $0x100] ss:$8 sps:$4 sm:$0xff]  }
 0x135   :  { %1870 = vmatprep.subr.bf16.mxu1 %v4668_v20 }
 0x137   :  { %1906 = vmatpush1.bf16.msra.mxu0 %v4669_v25 }
 0x138   :  { %1871 = vmatpush2.bf16.msra.mxu1 %v4666_v24  ;;  %2358 = vmatprep.subr.bf16.mxu0 %v4674_v26  ;;  %v4705_v26 = vld [vmem:[#allocation8 + $0xc0] ss:$8 sps:$4 sm:$0xff]  }
 0x139   :  { %2409 = vmatprep.subr.bf16.mxu1 %v4722_v35 }
 0x13a   :  { %1924 = vmatmul.mubr.bf16.vlgmr.msra.gmra.mxu0 %v5311_v62  ;;  %v4725_v62 = vld [vmem:[#allocation8 + $0x164] ss:$8 sps:$4 sm:$0xff]  }
 0x13b   :  { %1873 = vmatmul.mubr.bf16.vlgmr.msra.gmra.mxu1 %v5319_v42  ;;  %1933 = vmatprep.mubr.bf16.mxu0 %v5197_v38  ;;  %v4681_v42 = vld [vmem:[#allocation8 + $0x40] ss:$8 sps:$4 sm:$0xff]  }
 0x13c   :  { %1882 = vmatprep.mubr.bf16.mxu1 %v5321_v48  ;;  %2359 = vmatpush1.bf16.msra.mxu0 %v4672_v27  ;;  %v4723_v48 = vld [vmem:[#allocation8 + $0x160] ss:$8 sps:$4 sm:$0xff]   ;;  %v4746_v27 = vld [vmem:[#allocation8 + $0x1f4] ss:$8 sps:$4 sm:$0xff]  }
 0x13d   :  { %2360 = vmatprep.subr.bf16.mxu0 %v4677_v30  ;;  %2410 = vmatpush1.bf16.msra.mxu1 %v4720_v34  ;;  %v4710_v30 = vld [vmem:[#allocation8 + $0xb4] ss:$8 sps:$4 sm:$0xff]  }
 0x13e   :  { %2411 = vmatprep.subr.bf16.mxu1 %v4725_v62  ;;  %v4749_v62 = vld [vmem:[#allocation8 + $0x1e4] ss:$8 sps:$4 sm:$0xff]  }
 0x140   :  { %2361 = vmatpush1.bf16.msra.mxu0 %v4675_v31 }
 0x141   :  { %2362 = vmatprep.subr.bf16.mxu0 %v4680_v53  ;;  %2412 = vmatpush1.bf16.msra.mxu1 %v4723_v48  ;;  %v4747_v48 = vld [vmem:[#allocation8 + $0x1e0] ss:$8 sps:$4 sm:$0xff]  }
 0x142   :  { %1934 = vmatmul.mubr.bf16.gmra.mxu0 %v5315_v9  ;;  %2413 = vmatprep.subr.bf16.mxu1 %v4728_v36  ;;  %v4729_v9 = vld [vmem:[#allocation8 + $0x140] ss:$8 sps:$4 sm:$0xff]  }
 0x143   :  { %1883 = vmatmul.mubr.bf16.gmra.mxu1 %v5325_v55  ;;  %v4687_v55 = vld [vmem:[#allocation8 + $0x20] ss:$8 sps:$4 sm:$0xff]  }
 0x144   :  { %2363 = vmatpush1.bf16.msra.mxu0 %v4678_v32  ;;  %v4711_v36 = vld [vmem:[#allocation8 + $0xa0] ss:$8 sps:$4 sm:$0xff]  }
 0x145   :  { %2364 = vmatprep.subr.bf16.mxu0 %v4683_v33  ;;  %2414 = vmatpush1.bf16.msra.mxu1 %v4726_v39  ;;  %v4744_v33 = vld [vmem:[#allocation8 + $0x1f0] ss:$8 sps:$4 sm:$0xff]   ;;  %v4716_v39 = vld [vmem:[#allocation8 + $0x94] ss:$8 sps:$4 sm:$0xff]  }
 0x146   :  { %2415 = vmatprep.subr.bf16.mxu1 %v4731_v22  ;;  %v4714_v22 = vld [vmem:[#allocation8 + $0x90] ss:$8 sps:$4 sm:$0xff]  }
 0x148   :  { %2365 = vmatpush1.bf16.msra.mxu0 %v4681_v42  ;;  %v4708_v42 = vld [vmem:[#allocation8 + $0xb0] ss:$8 sps:$4 sm:$0xff]  }
 0x149   :  { %2366 = vmatprep.subr.bf16.mxu0 %v4686_v14  ;;  %2416 = vmatpush1.bf16.msra.mxu1 %v4729_v9  ;;  %v4713_v14 = vld [vmem:[#allocation8 + $0xa4] ss:$8 sps:$4 sm:$0xff]  }
 0x14a   :  { %2417 = vmatprep.subr.bf16.mxu1 %v4734_v56  ;;  %v4719_v9 = vld [vmem:[#allocation8 + $0x84] ss:$8 sps:$4 sm:$0xff]   ;;  %v4759_v56 = vld [vmem:[#allocation8 + $0x1a0] ss:$8 sps:$4 sm:$0xff]  }
 0x14c   :  { %2367 = vmatpush1.bf16.msra.mxu0 %v4684_v37  ;;  %v4752_v37 = vld [vmem:[#allocation8 + $0x1d4] ss:$8 sps:$4 sm:$0xff]  }
 0x14d   :  { %2368 = vmatprep.subr.bf16.mxu0 %v4689_v40  ;;  %2418 = vmatpush1.bf16.msra.mxu1 %v4732_v60  ;;  %v4750_v40 = vld [vmem:[#allocation8 + $0x1d0] ss:$8 sps:$4 sm:$0xff]  }
 0x14e   :  { %2419 = vmatprep.subr.bf16.mxu1 %v4737_v4 }
 0x150   :  { %2369 = vmatpush1.bf16.msra.mxu0 %v4687_v55  ;;  %v4755_v55 = vld [vmem:[#allocation8 + $0x1c4] ss:$8 sps:$4 sm:$0xff]  }
 0x151   :  { %2370 = vmatprep.subr.bf16.mxu0 %v4692_v43  ;;  %2420 = vmatpush1.bf16.msra.mxu1 %v4735_v8  ;;  %v4717_v43 = vld [vmem:[#allocation8 + $0x80] ss:$8 sps:$4 sm:$0xff]  }
 0x152   :  { %2421 = vmatprep.subr.bf16.mxu1 %v4740_v13 }
 0x154   :  { %2371 = vmatpush1.bf16.msra.mxu0 %v4690_v44  ;;  %v4758_v44 = vld [vmem:[#allocation8 + $0x1b4] ss:$8 sps:$4 sm:$0xff]  }
 0x155   :  { %2372 = vmatprep.subr.bf16.mxu0 %v4695_v45  ;;  %2422 = vmatpush1.bf16.msra.mxu1 %v4738_v17  ;;  %v4756_v45 = vld [vmem:[#allocation8 + $0x1b0] ss:$8 sps:$4 sm:$0xff]  }
 0x156   :  { %2423 = vmatprep.subr.bf16.mxu1 %v4743_v18 }
 0x158   :  { %2373 = vmatpush1.bf16.msra.mxu0 %v4693_v49 }
 0x159   :  { %2374 = vmatprep.subr.bf16.mxu0 %v4698_v57  ;;  %2424 = vmatpush1.bf16.msra.mxu1 %v4741_v23 }
 0x15a   :  { %v1568_v61 = vpop.f32.mrf.mxu0  ;;  %2425 = vmatprep.subr.bf16.mxu1 %v4746_v27 }
 0x15b   :  { %v1619_v63 = vpop.f32.mrf.mxu1  ;;  %v1569_v0 = vadd.f32 %v1568_v61, %v5355_v51  ;;  %v4764_v61 = vld [vmem:[#allocation8 + $0x194] ss:$8 sps:$4 sm:$0xff]  }
 0x15c   :  { %v1570_v1 = vpop.f32.mrf.mxu0  ;;  %2375 = vmatpush2.bf16.msra.mxu0 %v4696_v52  ;;  %v4761_v52 = vld [vmem:[#allocation8 + $0x1a4] ss:$8 sps:$4 sm:$0xff]  }
 0x15d   :  { %v1621_v2 = vpop.f32.mrf.mxu1  ;;  %v5362_v5 = vadd.f32 %v1619_v63, %v1569_v0  ;;  %v1571_v6 = vadd.f32 %v1570_v1, %v5359_v58  ;;  %2376 = vmatprep.subr.bf16.mxu0 %v4701_v59  ;;  %2426 = vmatpush2.bf16.msra.mxu1 %v4744_v33  ;;  %v4762_v63 = vld [vmem:[#allocation8 + $0x190] ss:$8 sps:$4 sm:$0xff]  }
 0x15e   :  { %v5365_v10 = vpop.f32.mrf.mxu0  ;;  %2427 = vmatprep.subr.bf16.mxu1 %v4749_v62 }
 0x15f   :  { %v5367_v15 = vpop.f32.mrf.mxu1  ;;  %v5369_v11 = vadd.f32 %v1621_v2, %v1571_v6  ;;  %v4767_v2 = vld [vmem:[#allocation8 + $0x184] ss:$8 sps:$4 sm:$0xff]  }
 0x160   :  { %v5371_v54 = vpop.f32.mrf.mxu0  ;;  %2377 = vmatpush2.bf16.msra.mxu0 %v4699_v3  ;;  %v4765_v3 = vld [vmem:[#allocation8 + $0x180] ss:$8 sps:$4 sm:$0xff]  }
 0x161   :  { %v5373_v21 = vpop.f32.mrf.mxu1  ;;  %2378 = vmatprep.subr.bf16.mxu0 %v4704_v7  ;;  %2428 = vmatpush2.bf16.msra.mxu1 %v4747_v48  ;;  %v1573_v7 = vadd.f32 %v5365_v10, %v5355_v51 }
 0x162   :  { %v1578_v19 = vpop.f32.mrf.mxu0  ;;  %2429 = vmatprep.subr.bf16.mxu1 %v4752_v37 }
 0x163   :  { %v1629_v28 = vpop.f32.mrf.mxu1  ;;  %v1579_v20 = vadd.f32 %v1578_v19, %v5355_v51  ;;  %v1624_v17 = vadd.f32 %v5367_v15, %v1573_v7 }
 0x164   :  { %v5378_v25 = vpop.f32.mrf.mxu0  ;;  %2379 = vmatpush2.bf16.msra.mxu0 %v4702_v12  ;;  %v1575_v12 = vadd.f32 %v5371_v54, %v5359_v58 }
 0x165   :  { %v5376_v24 = vpop.f32.mrf.mxu1  ;;  %2380 = vmatprep.subr.bf16.mxu0 %v4707_v16  ;;  %v5380_v31 = vadd.f32 %v1629_v28, %v1579_v20  ;;  %2430 = vmatpush2.bf16.msra.mxu1 %v4750_v40  ;;  %v1581_v20 = vadd.f32 %v5378_v25, %v5359_v58 }
 0x166   :  { %v1582_v32 = vpop.f32.mrf.mxu0  ;;  %2431 = vmatprep.subr.bf16.mxu1 %v4755_v55  ;;  %v1626_v19 = vadd.f32 %v5373_v21, %v1575_v12 }
 0x167   :  { %v1633_v53 = vpop.f32.mrf.mxu1  ;;  %v1632_v15 = vadd.f32 %v5376_v24, %v1581_v20 }
 0x168   :  { %v1583_v35 = vpop.f32.mrf.mxu0  ;;  %2381 = vmatpush2.bf16.msra.mxu0 %v4705_v26 }
 0x169   :  { %v1634_v34 = vpop.f32.mrf.mxu1  ;;  %2382 = vmatprep.subr.bf16.mxu0 %v4710_v30  ;;  %2432 = vmatpush2.bf16.msra.mxu1 %v4753_v41 }
 0x16a   :  { %2433 = vmatprep.subr.bf16.mxu1 %v4758_v44 }
 0x16c   :  { %2383 = vmatpush2.bf16.msra.mxu0 %v4708_v42 }
 0x16d   :  { %2384 = vmatprep.subr.bf16.mxu0 %v4713_v14  ;;  %2434 = vmatpush2.bf16.msra.mxu1 %v4756_v45 }
 0x16e   :  { %2435 = vmatprep.subr.bf16.mxu1 %v4761_v52 }
 0x170   :  { %2385 = vmatpush2.bf16.msra.mxu0 %v4711_v36 }
 0x171   :  { %2386 = vmatprep.subr.bf16.mxu0 %v4716_v39  ;;  %2436 = vmatpush2.bf16.msra.mxu1 %v4759_v56 }
 0x172   :  { %2437 = vmatprep.subr.bf16.mxu1 %v4764_v61 }
 0x174   :  { %2387 = vmatpush2.bf16.msra.mxu0 %v4714_v22 }
 0x175   :  { %2388 = vmatprep.subr.bf16.mxu0 %v4719_v9  ;;  %2438 = vmatpush2.bf16.msra.mxu1 %v4762_v63  ;;  %v408_v63 = vsub.s32 3, %v5343_v29 }
 0x176   :  { %2439 = vmatprep.subr.bf16.mxu1 %v4767_v2 }
 0x178   :  { %2389 = vmatpush2.bf16.msra.mxu0 %v4717_v43 }
 0x179   :  { %2440 = vmatpush2.bf16.msra.mxu1 %v4765_v3  ;;  %v4768_v3 = vld [vmem:[#allocation10 + $0x78] sm:$0xff]  }
 0x17a   :  { %4261 = vmatprep.subr.bf16.mxu0 %v4768_v3 }
 0x17b   :  { %v1721_v49 = vpop.f32.mrf.mxu1 }
 0x17d   :  { %v1723_v57 = vpop.f32.mrf.mxu1 }
 0x17f   :  { %v1725_v59 = vpop.f32.mrf.mxu1 }
 0x181   :  { %v1727_v60 = vpop.f32.mrf.mxu1 }
 0x183   :  { %v1731_v0 = vpop.f32.mrf.mxu1 }
 0x185   :  { %v1733_v1 = vpop.f32.mrf.mxu1 }
 0x187   :  { %v1735_v4 = vpop.f32.mrf.mxu1 }
 0x188   :  { %v4769_v4 = vld [vmem:[#allocation10 + $0x38] sm:$0xff]  }
 0x189   :  { %v1736_v6 = vpop.f32.mrf.mxu1 }
 0x18a   :  { %v4770_v6 = vld [vmem:[#allocation10 + $0x70] sm:$0xff]  }
 0x19a   :  { %v1670_v8 = vpop.f32.mrf.mxu0 }
 0x19b   :  { %v1671_v13 = vadd.f32 %v1670_v8, %v5362_v5 }
 0x19c   :  { %v1672_v16 = vpop.f32.mrf.mxu0 }
 0x19d   :  { %v1673_v18 = vadd.f32 %v1672_v16, %v5369_v11  ;;  %v1722_v23 = vadd.f32 %v1721_v49, %v1671_v13 }
 0x19e   :  { %v1674_v28 = vpop.f32.mrf.mxu0 }
 0x19f   :  { %v1675_v26 = vadd.f32 %v1674_v28, %v1624_v17  ;;  %v1724_v10 = vadd.f32 %v1723_v57, %v1673_v18  ;;  %v1942_v53 = vmax.f32 %v1722_v23, 0.0  ;;  %v4771_v18 = vld [vmem:[#allocation10 + $0x30] sm:$0xff]   ;;  %v4772_v23 = vld [vmem:[#allocation10 + $0x68] sm:$0xff]  }
 0x1a0   :  { %v1676_v51 = vpop.f32.mrf.mxu0 }
 0x1a1   :  { %v1726_v27 = vadd.f32 %v1725_v59, %v1675_v26  ;;  %v1677_v30 = vadd.f32 %v1676_v51, %v1626_v19  ;;  %v1943_v34 = vmax.f32 %v1724_v10, 0.0 }
 0x1a2   :  { %v1680_v54 = vpop.f32.mrf.mxu0 }
 0x1a3   :  { %v1946_v5 = vmax.f32 %v1726_v27, 0.0  ;;  %v1728_v32 = vadd.f32 %v1727_v60, %v1677_v30  ;;  %v1681_v11 = vadd.f32 %v1680_v54, %v5380_v31 }
 0x1a4   :  { %v1682_v33 = vpop.f32.mrf.mxu0 }
 0x1a5   :  { %v1954_v21 = vpack.c.bf16 %v1946_v5, %v1942_v53  ;;  %v1947_v35 = vmax.f32 %v1728_v32, 0.0  ;;  %v1683_v42 = vadd.f32 %v1682_v33, %v1632_v15  ;;  %v1732_v14 = vadd.f32 %v1731_v0, %v1681_v11  ;;  %v4773_v15 = vld [vmem:[#allocation10 + $0x28] sm:$0xff]  }
 0x1a6   :  { %v1684_v58 = vpop.f32.mrf.mxu0  ;;  %v404_v0 = vsub.s32 2, %v5343_v29 }
 0x1a7   :  { %v1734_v25 = vadd.f32 %v1733_v1, %v1683_v42  ;;  %v1955_v62 = vpack.c.bf16 %v1947_v35, %v1943_v34  ;;  %v1950_v39 = vmax.f32 %v1732_v14, 0.0  ;;  %v409_v1 = vrot.slane %v5348_v47, %v408_v63  ;;  %v4774_v34 = vld [vmem:[#allocation10 + $0x60] sm:$0xff]  }
 0x1a8   :  { %v1685_v48 = vpop.f32.mrf.mxu0  ;;  %v405_v2 = vrot.slane %v5348_v47, %v404_v0 }
 0x1a9   :  { %v1951_v36 = vmax.f32 %v1734_v25, 0.0  ;;  %2390 = vmatprep.mubr.bf16.mxu0 %v1955_v62  ;;  %v1958_v40 = vpack.c.bf16 %v1950_v39, %v1950_v39 }
 0x1aa   :  { %2391 = vmatmul.mubr.bf16.vlgmr.msra.gmra.mxu0 %v1954_v21 }
 0x1ab   :  { %v1959_v37 = vpack.c.bf16 %v1951_v36, %v1951_v36  ;;  %4262 = vmatpush3.bf16.msra.mxu0 %v4769_v4 }
 0x1ac   :  { %4263 = vmatprep.subr.bf16.mxu0 %v4770_v6  ;;  %v4778_v6 = vld [vmem:[#allocation10 + $0x50] sm:$0xff]  }
 0x1ad   :  { %2400 = vmatprep.mubr.bf16.mxu0 %v1959_v37  ;;  %v4775_v37 = vld [vmem:[#allocation10 + $0x20] sm:$0xff]  }
 0x1af   :  { %4264 = vmatpush3.bf16.msra.mxu0 %v4771_v18  ;;  %v4786_v18 = vld [vmem:[#allocation11 + $0x74] ss:$8 sps:$4 sm:$0xff]  }
 0x1b0   :  { %4265 = vmatprep.subr.bf16.mxu0 %v4772_v23  ;;  %2763 = vmatprep.subr.bf16.mxu1 %v4786_v18  ;;  %v4790_v23 = vld [vmem:[#allocation11 + $0x50] ss:$8 sps:$4 sm:$0xff]  }
 0x1b1   :  { %v4813_v18 = vld [vmem:[#allocation13 + $0x194] ss:$28 sps:$4 sm:$0xff]  }
 0x1b2   :  { %2401 = vmatmul.mubr.bf16.gmra.mxu0 %v1958_v40 }
 0x1b3   :  { %4266 = vmatpush3.bf16.msra.mxu0 %v4773_v15 }
 0x1b4   :  { %4267 = vmatprep.subr.bf16.mxu0 %v4774_v34 }
 0x1b7   :  { %4268 = vmatpush3.bf16.msra.mxu0 %v4775_v37 }
 0x1bb   :  { %v1772_v24 = vpop.f32.mrf.mxu1 }
 0x1bc   :  { %v1773_v8 = vadd.f32 %v1772_v24, %v405_v2 }
 0x1bd   :  { %v1774_v31 = vpop.f32.mrf.mxu1 }
 0x1be   :  { %v1775_v7 = vadd.f32 %v1774_v31, %v409_v1 }
 0x1bf   :  { %v1776_v22 = vpop.f32.mrf.mxu1 }
 0x1c0   :  { %v1777_v16 = vadd.f32 %v1776_v22, %v405_v2  ;;  %v4776_v22 = vld [vmem:[#allocation10 + $0x58] sm:$0xff]  }
 0x1c1   :  { %v1778_v55 = vpop.f32.mrf.mxu1  ;;  %4269 = vmatprep.subr.bf16.mxu0 %v4776_v22 }
 0x1c2   :  { %v1779_v26 = vadd.f32 %v1778_v55, %v409_v1 }
 0x1c3   :  { %v1782_v9 = vpop.f32.mrf.mxu1 }
 0x1c4   :  { %v1783_v10 = vadd.f32 %v1782_v9, %v405_v2 }
 0x1c5   :  { %v1784_v41 = vpop.f32.mrf.mxu1 }
 0x1c6   :  { %v1785_v5 = vadd.f32 %v1784_v41, %v409_v1 }
 0x1c7   :  { %v1786_v43 = vpop.f32.mrf.mxu1 }
 0x1c9   :  { %v1787_v44 = vpop.f32.mrf.mxu1 }
 0x1da   :  { %v1823_v45 = vpop.f32.mrf.mxu0 }
 0x1db   :  { %v1824_v28 = vadd.f32 %v1823_v45, %v1773_v8  ;;  %v4780_v8 = vld [vmem:[#allocation10 + $0x48] sm:$0xff]  }
 0x1dc   :  { %v1825_v49 = vpop.f32.mrf.mxu0 }
 0x1dd   :  { %v1826_v17 = vadd.f32 %v1825_v49, %v1775_v7  ;;  %v4779_v7 = vld [vmem:[#allocation10 + $0x10] sm:$0xff]  }
 0x1de   :  { %v1827_v57 = vpop.f32.mrf.mxu0 }
 0x1df   :  { %v1828_v51 = vadd.f32 %v1827_v57, %v1777_v16  ;;  %v4783_v16 = vld [vmem:[#allocation10] sm:$0xff]  }
 0x1e0   :  { %v1829_v52 = vpop.f32.mrf.mxu0 }
 0x1e1   :  { %v1830_v53 = vadd.f32 %v1829_v52, %v1779_v26  ;;  %v4777_v52 = vld [vmem:[#allocation10 + $0x18] sm:$0xff]   ;;  %v4795_v26 = vld [vmem:[#allocation11 + $0x44] ss:$8 sps:$4 sm:$0xff]  }
 0x1e2   :  { %v1833_v56 = vpop.f32.mrf.mxu0  ;;  %4270 = vmatpush3.bf16.msra.mxu0 %v4777_v52 }
 0x1e3   :  { %v1834_v58 = vadd.f32 %v1833_v56, %v1783_v10  ;;  %4271 = vmatprep.subr.bf16.mxu0 %v4778_v6  ;;  %v4799_v6 = vld [vmem:[#allocation11 + $0x20] ss:$8 sps:$4 sm:$0xff]  }
 0x1e4   :  { %v1835_v59 = vpop.f32.mrf.mxu0 }
 0x1e5   :  { %v1836_v48 = vadd.f32 %v1835_v59, %v1785_v5 }
 0x1e6   :  { %v1837_v60 = vpop.f32.mrf.mxu0  ;;  %4272 = vmatpush3.bf16.msra.mxu0 %v4779_v7  ;;  %v4804_v7 = vld [vmem:[#allocation11 + $0x14] ss:$8 sps:$4 sm:$0xff]  }
 0x1e7   :  { %4273 = vmatprep.subr.bf16.mxu0 %v4780_v8  ;;  %v4802_v8 = vld [vmem:[#allocation11 + $0x10] ss:$8 sps:$4 sm:$0xff]  }
 0x1e8   :  { %v1838_v61 = vpop.f32.mrf.mxu0 }
 0x1fa   :  { %v1925_v13 = vpop.f32.mrf.mxu0 }
 0x1fb   :  { %v1874_v12 = vpop.f32.mrf.mxu1 }
 0x1fc   :  { %v1927_v20 = vpop.f32.mrf.mxu0  ;;  %v1875_v27 = vadd.f32 %v1874_v12, %v1824_v28  ;;  %v4781_v12 = vld [vmem:[#allocation10 + $0x8] sm:$0xff]  }
 0x1fd   :  { %v1876_v19 = vpop.f32.mrf.mxu1  ;;  %4274 = vmatpush3.bf16.msra.mxu0 %v4781_v12  ;;  %v4789_v28 = vld [vmem:[#allocation11 + $0x64] ss:$8 sps:$4 sm:$0xff]  }
 0x1fe   :  { %v1877_v47 = vadd.f32 %v1876_v19, %v1826_v17  ;;  %v1929_v54 = vpop.f32.mrf.mxu0  ;;  %v1926_v25 = vadd.f32 %v1925_v13, %v1875_v27  ;;  %v4782_v13 = vld [vmem:[#allocation10 + $0x40] sm:$0xff]   ;;  %v4784_v17 = vld [vmem:[#allocation11 + $0x70] ss:$8 sps:$4 sm:$0xff]   ;;  %v4798_v27 = vld [vmem:[#allocation11 + $0x34] ss:$8 sps:$4 sm:$0xff]  }
 0x1ff   :  { %v1878_v30 = vpop.f32.mrf.mxu1  ;;  %4275 = vmatprep.subr.bf16.mxu0 %v4782_v13  ;;  %v4787_v19 = vld [vmem:[#allocation11 + $0x60] ss:$8 sps:$4 sm:$0xff]   ;;  %v4807_v12 = vld [vmem:[#allocation11 + $0x4] ss:$8 sps:$4 sm:$0xff]  }
 0x200   :  { %v1879_v32 = vadd.f32 %v1878_v30, %v1828_v51  ;;  %v1931_v33 = vpop.f32.mrf.mxu0  ;;  %v1928_v21 = vadd.f32 %v1927_v20, %v1877_v47  ;;  %v1944_v43 = vmax.f32 %v1926_v25, 0.0  ;;  %v4792_v20 = vld [vmem:[#allocation11 + $0x54] ss:$8 sps:$4 sm:$0xff]   ;;  %v4793_v47 = vld [vmem:[#allocation11 + $0x40] ss:$8 sps:$4 sm:$0xff]  }
 0x201   :  { %v1880_v11 = vpop.f32.mrf.mxu1  ;;  %4276 = vmatpush3.bf16.msra.mxu0 %v4783_v16  ;;  %v4805_v13 = vld [vmem:[#allocation11] ss:$8 sps:$4 sm:$0xff]  }
 0x202   :  { %v1930_v35 = vadd.f32 %v1929_v54, %v1879_v32  ;;  %v1881_v42 = vadd.f32 %v1880_v11, %v1830_v53  ;;  %v1935_v14 = vpop.f32.mrf.mxu0  ;;  %v1945_v55 = vmax.f32 %v1928_v21, 0.0  ;;  %v4796_v54 = vld [vmem:[#allocation11 + $0x30] ss:$8 sps:$4 sm:$0xff]   ;;  %v4808_v16 = vld [vmem:[#allocation13 + $0x188] ss:$28 sps:$4 sm:$0xff]  }
 0x203   :  { %v1884_v62 = vpop.f32.mrf.mxu1 }
 0x204   :  { %v1932_v36 = vadd.f32 %v1931_v33, %v1881_v42  ;;  %v1948_v39 = vmax.f32 %v1930_v35, 0.0  ;;  %v1885_v40 = vadd.f32 %v1884_v62, %v1834_v58  ;;  %v1937_v31 = vpop.f32.mrf.mxu0  ;;  %v2026_v33 = vld [vmem:[%s5466_s4] sm:$0x3] }
 0x205   :  { %v1886_v24 = vpop.f32.mrf.mxu1  ;;  %v2031_v34 = vrot.slane %v2026_v33, %v5346_v46  ;;  %v2035_v21 = vrot.slane %v2026_v33, %v5351_v50  ;;  %v4864_v33 = vld [vmem:[#allocation13 + $0x314] ss:$28 sps:$4 sm:$0xff]  }
 0x206   :  { %v1949_v9 = vmax.f32 %v1932_v36, 0.0  ;;  %v1887_v41 = vadd.f32 %v1886_v24, %v1836_v48  ;;  %v1939_v45 = vpop.f32.mrf.mxu0  ;;  %v1956_v56 = vpack.c.bf16 %v1948_v39, %v1944_v43  ;;  %v1936_v59 = vadd.f32 %v1935_v14, %v1885_v40 }
 0x207   :  { %v1888_v44 = vpop.f32.mrf.mxu1 }
 0x208   :  { %v1957_v49 = vpack.c.bf16 %v1949_v9, %v1945_v55  ;;  %v1938_v57 = vadd.f32 %v1937_v31, %v1887_v41  ;;  %v1940_v61 = vpop.f32.mrf.mxu0  ;;  %v1952_v3 = vmax.f32 %v1936_v59, 0.0 }
 0x209   :  { %v1889_v60 = vpop.f32.mrf.mxu1 }
 0x20a   :  { %v1953_v1 = vmax.f32 %v1938_v57, 0.0  ;;  %2441 = vmatprep.mubr.bf16.mxu1 %v1957_v49  ;;  %v1960_v4 = vpack.c.bf16 %v1952_v3, %v1952_v3 }
 0x20b   :  { %2442 = vmatmul.mubr.bf16.vlgmr.msra.gmra.mxu1 %v1956_v56 }
 0x20c   :  { %v1961_v2 = vpack.c.bf16 %v1953_v1, %v1953_v1  ;;  %2764 = vmatpush1.bf16.msra.mxu1 %v4784_v17  ;;  %v4810_v17 = vld [vmem:[#allocation13 + $0x18c] ss:$28 sps:$4 sm:$0xff]  }
 0x20d   :  { %2765 = vmatprep.subr.bf16.mxu1 %v4789_v28  ;;  %v4816_v28 = vld [vmem:[#allocation13 + $0x154] ss:$28 sps:$4 sm:$0xff]   ;;  %3565 = vmatprep.subr.bf16.mxu0 %v4810_v17 }
 0x20e   :  { %2451 = vmatprep.mubr.bf16.mxu1 %v1961_v2  ;;  %v4859_v17 = vld [vmem:[#allocation13 + $0x350] ss:$28 sps:$4 sm:$0xff]  }
 0x210   :  { %2766 = vmatpush1.bf16.msra.mxu1 %v4787_v19  ;;  %v4814_v19 = vld [vmem:[#allocation13 + $0x150] ss:$28 sps:$4 sm:$0xff]  }
 0x211   :  { %2767 = vmatprep.subr.bf16.mxu1 %v4792_v20  ;;  %v4822_v20 = vld [vmem:[#allocation13 + $0x11c] ss:$28 sps:$4 sm:$0xff]  }
 0x213   :  { %2452 = vmatmul.mubr.bf16.gmra.mxu1 %v1960_v4  ;;  %v4801_v4 = vld [vmem:[#allocation11 + $0x24] ss:$8 sps:$4 sm:$0xff]  }
 0x214   :  { %2795 = vmatprep.mubr.bf16.mxu1 %v5197_v38  ;;  %2768 = vmatpush1.bf16.msra.mxu1 %v4790_v23  ;;  %v4820_v23 = vld [vmem:[#allocation13 + $0x118] ss:$28 sps:$4 sm:$0xff]  }
 0x215   :  { %2769 = vmatprep.subr.bf16.mxu1 %v4795_v26  ;;  %v4828_v26 = vld [vmem:[#allocation13 + $0xe4] ss:$28 sps:$4 sm:$0xff]  }
 0x218   :  { %2770 = vmatpush1.bf16.msra.mxu1 %v4793_v47  ;;  %v4834_v47 = vld [vmem:[#allocation13 + $0xac] ss:$28 sps:$4 sm:$0xff]  }
 0x219   :  { %2771 = vmatprep.subr.bf16.mxu1 %v4798_v27  ;;  %v4840_v27 = vld [vmem:[#allocation13 + $0x74] ss:$28 sps:$4 sm:$0xff]  }
 0x21c   :  { %2772 = vmatpush1.bf16.msra.mxu1 %v4796_v54  ;;  %v4846_v54 = vld [vmem:[#allocation13 + $0x3c] ss:$28 sps:$4 sm:$0xff]  }
 0x21d   :  { %2773 = vmatprep.subr.bf16.mxu1 %v4801_v4  ;;  %v4835_v4 = vld [vmem:[#allocation13 + $0xb0] ss:$28 sps:$4 sm:$0xff]  }
 0x220   :  { %2774 = vmatpush1.bf16.msra.mxu1 %v4799_v6  ;;  %v4843_v6 = vld [vmem:[#allocation13 + $0x7c] ss:$28 sps:$4 sm:$0xff]  }
 0x221   :  { %2775 = vmatprep.subr.bf16.mxu1 %v4804_v7  ;;  %v4849_v7 = vld [vmem:[#allocation13 + $0x44] ss:$28 sps:$4 sm:$0xff]  }
 0x224   :  { %2776 = vmatpush1.bf16.msra.mxu1 %v4802_v8  ;;  %v4847_v8 = vld [vmem:[#allocation13 + $0x40] ss:$28 sps:$4 sm:$0xff]  }
 0x225   :  { %2777 = vmatprep.subr.bf16.mxu1 %v4807_v12  ;;  %v4855_v12 = vld [vmem:[#allocation13 + $0xc] ss:$28 sps:$4 sm:$0xff]  }
 0x228   :  { %2778 = vmatpush1.bf16.msra.mxu1 %v4805_v13  ;;  %v4853_v13 = vld [vmem:[#allocation13 + $0x8] ss:$28 sps:$4 sm:$0xff]  }
 0x229   :  { %3616 = vmatprep.subr.bf16.mxu1 %v4813_v18  ;;  %v4867_v18 = vld [vmem:[#allocation13 + $0x31c] ss:$28 sps:$4 sm:$0xff]  }
 0x26a   :  { %v2392_v51 = vpop.f32.mrf.mxu0 }
 0x26b   :  { %v2393_v42 = vadd.f32 %v2392_v51, %v2031_v34  ;;  %v4826_v51 = vld [vmem:[#allocation13 + $0xe0] ss:$28 sps:$4 sm:$0xff]  }
 0x26c   :  { %v2394_v10 = vpop.f32.mrf.mxu0 }
 0x26d   :  { %v2395_v25 = vadd.f32 %v2394_v10, %v2035_v21  ;;  %v4832_v10 = vld [vmem:[#allocation13 + $0xa8] ss:$28 sps:$4 sm:$0xff]  }
 0x26e   :  { %v2396_v30 = vpop.f32.mrf.mxu0 }
 0x26f   :  { %v2397_v62 = vadd.f32 %v2396_v30, %v2031_v34  ;;  %v4838_v30 = vld [vmem:[#allocation13 + $0x70] ss:$28 sps:$4 sm:$0xff]  }
 0x270   :  { %v2398_v53 = vpop.f32.mrf.mxu0 }
 0x271   :  { %v2399_v36 = vadd.f32 %v2398_v53, %v2035_v21  ;;  %v4844_v53 = vld [vmem:[#allocation13 + $0x38] ss:$28 sps:$4 sm:$0xff]  }
 0x272   :  { %v2402_v5 = vpop.f32.mrf.mxu0 }
 0x273   :  { %v2403_v45 = vadd.f32 %v2402_v5, %v2031_v34  ;;  %v4852_v5 = vld [vmem:[#allocation13 + $0x4] ss:$28 sps:$4 sm:$0xff]   ;;  %v4862_v34 = vld [vmem:[#allocation13 + $0x310] ss:$28 sps:$4 sm:$0xff]  }
 0x274   :  { %v2404_v32 = vpop.f32.mrf.mxu0 }
 0x275   :  { %v2405_v9 = vadd.f32 %v2404_v32, %v2035_v21  ;;  %v4850_v32 = vld [vmem:[#allocation13] ss:$28 sps:$4 sm:$0xff]  }
 0x276   :  { %v2406_v15 = vpop.f32.mrf.mxu0  ;;  %v4870_v21 = vld [vmem:[#allocation13 + $0x2dc] ss:$28 sps:$4 sm:$0xff]  }
 0x277   :  { %v4858_v15 = vld [vmem:[#allocation13 + $0x34c] ss:$28 sps:$4 sm:$0xff]  }
 0x278   :  { %v2407_v11 = vpop.f32.mrf.mxu0 }
 0x279   :  { %v4856_v11 = vld [vmem:[#allocation13 + $0x348] ss:$28 sps:$4 sm:$0xff]  }
 0x2cb   :  { %v2443_v35 = vpop.f32.mrf.mxu1 }
 0x2cc   :  { %v2444_v14 = vadd.f32 %v2443_v35, %v2393_v42  ;;  %v4868_v35 = vld [vmem:[#allocation13 + $0x2d8] ss:$28 sps:$4 sm:$0xff]   ;;  %v4876_v42 = vld [vmem:[#allocation13 + $0x2a4] ss:$28 sps:$4 sm:$0xff]  }
 0x2cd   :  { %v2445_v58 = vpop.f32.mrf.mxu1 }
 0x2ce   :  { %v2446_v37 = vadd.f32 %v2445_v58, %v2395_v25  ;;  %v2460_v24 = vmax.f32 %v2444_v14, 0.0  ;;  %v4874_v58 = vld [vmem:[#allocation13 + $0x2a0] ss:$28 sps:$4 sm:$0xff]   ;;  %v4882_v25 = vld [vmem:[#allocation13 + $0x26c] ss:$28 sps:$4 sm:$0xff]  }
 0x2cf   :  { %v2447_v48 = vpop.f32.mrf.mxu1 }
 0x2d0   :  { %v2448_v39 = vadd.f32 %v2447_v48, %v2397_v62  ;;  %v2461_v41 = vmax.f32 %v2446_v37, 0.0  ;;  %v4880_v62 = vld [vmem:[#allocation13 + $0x268] ss:$28 sps:$4 sm:$0xff]  }
 0x2d1   :  { %v2449_v40 = vpop.f32.mrf.mxu1 }
 0x2d2   :  { %v2462_v31 = vmax.f32 %v2448_v39, 0.0  ;;  %v2450_v22 = vadd.f32 %v2449_v40, %v2399_v36  ;;  %v4116_v39 = vld [vmem:[%s5468_s6] ss:$0 sm:$0xff] }
 0x2d3   :  { %v2453_v55 = vpop.f32.mrf.mxu1 }
 0x2d4   :  { %v2466_v43 = vpack.c.bf16 %v2462_v31, %v2460_v24  ;;  %v2463_v44 = vmax.f32 %v2450_v22, 0.0  ;;  %v2454_v56 = vadd.f32 %v2453_v55, %v2403_v45  ;;  %v4819_v45 = vld [vmem:[#allocation13 + $0x15c] ss:$28 sps:$4 sm:$0xff]  }
 0x2d5   :  { %v2455_v49 = vpop.f32.mrf.mxu1 }
 0x2d6   :  { %v2467_v57 = vpack.c.bf16 %v2463_v44, %v2461_v41  ;;  %v2456_v52 = vadd.f32 %v2455_v49, %v2405_v9  ;;  %v2464_v2 = vmax.f32 %v2454_v56, 0.0  ;;  %v4811_v41 = vld [vmem:[#allocation13 + $0x190] ss:$28 sps:$4 sm:$0xff]  }
 0x2d7   :  { %v2457_v59 = vpop.f32.mrf.mxu1 }
 0x2d8   :  { %v2465_v60 = vmax.f32 %v2456_v52, 0.0  ;;  %2637 = vmatprep.mubr.bf16.mxu0 %v2467_v57  ;;  %v2468_v3 = vpack.c.bf16 %v2464_v2, %v2464_v2  ;;  %v4817_v52 = vld [vmem:[#allocation13 + $0x158] ss:$28 sps:$4 sm:$0xff]   ;;  %v4825_v59 = vld [vmem:[#allocation13 + $0x124] ss:$28 sps:$4 sm:$0xff]  }
 0x2d9   :  { %v2458_v61 = vpop.f32.mrf.mxu1  ;;  %2638 = vmatmul.mubr.bf16.vlgmr.msra.gmra.mxu0 %v2466_v43  ;;  %v4829_v2 = vld [vmem:[#allocation13 + $0xe8] ss:$28 sps:$4 sm:$0xff]  }
 0x2da   :  { %v2469_v1 = vpack.c.bf16 %v2465_v60, %v2465_v60  ;;  %3566 = vmatpush1.bf16.msra.mxu0 %v4808_v16  ;;  %v4823_v60 = vld [vmem:[#allocation13 + $0x120] ss:$28 sps:$4 sm:$0xff]   ;;  %v4861_v16 = vld [vmem:[#allocation13 + $0x354] ss:$28 sps:$4 sm:$0xff]  }
 0x2db   :  { %3567 = vmatprep.subr.bf16.mxu0 %v4816_v28  ;;  %v4865_v28 = vld [vmem:[#allocation13 + $0x318] ss:$28 sps:$4 sm:$0xff]  }
 0x2dc   :  { %2645 = vmatprep.mubr.bf16.mxu0 %v2469_v1  ;;  %v4831_v1 = vld [vmem:[#allocation13 + $0xec] ss:$28 sps:$4 sm:$0xff]  }
 0x2de   :  { %3568 = vmatpush1.bf16.msra.mxu0 %v4814_v19  ;;  %v4873_v19 = vld [vmem:[#allocation13 + $0x2e4] ss:$28 sps:$4 sm:$0xff]  }
 0x2df   :  { %3569 = vmatprep.subr.bf16.mxu0 %v4822_v20  ;;  %v4871_v20 = vld [vmem:[#allocation13 + $0x2e0] ss:$28 sps:$4 sm:$0xff]  }
 0x2e1   :  { %2646 = vmatmul.mubr.bf16.gmra.mxu0 %v2468_v3  ;;  %v4837_v3 = vld [vmem:[#allocation13 + $0xb4] ss:$28 sps:$4 sm:$0xff]  }
 0x2e2   :  { %3570 = vmatpush1.bf16.msra.mxu0 %v4820_v23  ;;  %v4879_v23 = vld [vmem:[#allocation13 + $0x2ac] ss:$28 sps:$4 sm:$0xff]  }
 0x2e3   :  { %3571 = vmatprep.subr.bf16.mxu0 %v4828_v26  ;;  %v4877_v26 = vld [vmem:[#allocation13 + $0x2a8] ss:$28 sps:$4 sm:$0xff]  }
 0x2e6   :  { %3572 = vmatpush1.bf16.msra.mxu0 %v4826_v51  ;;  %v4885_v51 = vld [vmem:[#allocation13 + $0x274] ss:$28 sps:$4 sm:$0xff]  }
 0x2e7   :  { %3573 = vmatprep.subr.bf16.mxu0 %v4834_v47  ;;  %v4883_v47 = vld [vmem:[#allocation13 + $0x270] ss:$28 sps:$4 sm:$0xff]  }
 0x2ea   :  { %3574 = vmatpush1.bf16.msra.mxu0 %v4832_v10  ;;  %v4888_v10 = vld [vmem:[#allocation13 + $0x234] ss:$28 sps:$4 sm:$0xff]  }
 0x2eb   :  { %3575 = vmatprep.subr.bf16.mxu0 %v4840_v27  ;;  %v4891_v27 = vld [vmem:[#allocation13 + $0x23c] ss:$28 sps:$4 sm:$0xff]  }
 0x2ee   :  { %3576 = vmatpush1.bf16.msra.mxu0 %v4838_v30  ;;  %v4886_v30 = vld [vmem:[#allocation13 + $0x230] ss:$28 sps:$4 sm:$0xff]  }
 0x2ef   :  { %3577 = vmatprep.subr.bf16.mxu0 %v4846_v54  ;;  %v4889_v54 = vld [vmem:[#allocation13 + $0x238] ss:$28 sps:$4 sm:$0xff]  }
 0x2f2   :  { %3578 = vmatpush1.bf16.msra.mxu0 %v4844_v53  ;;  %v4894_v53 = vld [vmem:[#allocation13 + $0x1fc] ss:$28 sps:$4 sm:$0xff]  }
 0x2f3   :  { %3579 = vmatprep.subr.bf16.mxu0 %v4852_v5  ;;  %v4897_v5 = vld [vmem:[#allocation13 + $0x204] ss:$28 sps:$4 sm:$0xff]  }
 0x2f6   :  { %3580 = vmatpush1.bf16.msra.mxu0 %v4850_v32  ;;  %v4892_v32 = vld [vmem:[#allocation13 + $0x1f8] ss:$28 sps:$4 sm:$0xff]  }
 0x2f7   :  { %3581 = vmatprep.subr.bf16.mxu0 %v4858_v15  ;;  %v4895_v15 = vld [vmem:[#allocation13 + $0x200] ss:$28 sps:$4 sm:$0xff]  }
 0x2fa   :  { %3582 = vmatpush2.bf16.msra.mxu0 %v4856_v11  ;;  %v4900_v11 = vld [vmem:[#allocation13 + $0x1c4] ss:$28 sps:$4 sm:$0xff]  }
 0x2fb   :  { %3583 = vmatprep.subr.bf16.mxu0 %v4864_v33  ;;  %v4903_v33 = vld [vmem:[#allocation13 + $0x1cc] ss:$28 sps:$4 sm:$0xff]  }
 0x2fe   :  { %3584 = vmatpush2.bf16.msra.mxu0 %v4862_v34  ;;  %v4898_v34 = vld [vmem:[#allocation13 + $0x1c0] ss:$28 sps:$4 sm:$0xff]  }
 0x2ff   :  { %3585 = vmatprep.subr.bf16.mxu0 %v4870_v21  ;;  %v4901_v21 = vld [vmem:[#allocation13 + $0x1c8] ss:$28 sps:$4 sm:$0xff]  }
 0x302   :  { %3586 = vmatpush2.bf16.msra.mxu0 %v4868_v35  ;;  %v4906_v35 = vld [vmem:[#allocation13 + $0x19c] ss:$28 sps:$4 sm:$0xff]  }
 0x303   :  { %3587 = vmatprep.subr.bf16.mxu0 %v4876_v42  ;;  %v4907_v42 = vld [vmem:[#allocation13 + $0x360] ss:$28 sps:$4 sm:$0xff]  }
 0x306   :  { %3588 = vmatpush2.bf16.msra.mxu0 %v4874_v58  ;;  %v2671_v58 = vld [vmem:[%s5470_s8] sm:$0x3] }
 0x307   :  { %3589 = vmatprep.subr.bf16.mxu0 %v4882_v25 }
 0x30a   :  { %3590 = vmatpush2.bf16.msra.mxu0 %v4880_v62  ;;  %v2680_v62 = vrot.slane %v2671_v58, %v5351_v50 }
 0x30b   :  { %3591 = vmatprep.subr.bf16.mxu0 %v4888_v10  ;;  %v4931_v10 = vld [vmem:[#allocation13 + $0x84] ss:$28 sps:$4 sm:$0xff]  }
 0x30e   :  { %3592 = vmatpush2.bf16.msra.mxu0 %v4886_v30  ;;  %v4929_v30 = vld [vmem:[#allocation13 + $0x80] ss:$28 sps:$4 sm:$0xff]  }
 0x30f   :  { %3593 = vmatprep.subr.bf16.mxu0 %v4894_v53  ;;  %v4936_v53 = vld [vmem:[#allocation13 + $0x4c] ss:$28 sps:$4 sm:$0xff]  }
 0x312   :  { %3594 = vmatpush2.bf16.msra.mxu0 %v4892_v32  ;;  %v4934_v32 = vld [vmem:[#allocation13 + $0x48] ss:$28 sps:$4 sm:$0xff]  }
 0x313   :  { %3595 = vmatprep.subr.bf16.mxu0 %v4900_v11  ;;  %v4941_v11 = vld [vmem:[#allocation13 + $0x14] ss:$28 sps:$4 sm:$0xff]  }
 0x316   :  { %3596 = vmatpush2.bf16.msra.mxu0 %v4898_v34  ;;  %v4939_v34 = vld [vmem:[#allocation13 + $0x10] ss:$28 sps:$4 sm:$0xff]  }
 0x317   :  { %3667 = vmatprep.subr.bf16.mxu0 %v4906_v35  ;;  %v4946_v35 = vld [vmem:[#allocation13 + $0x35c] ss:$28 sps:$4 sm:$0xff]  }
 0x399   :  { %v4277_v14 = vpop.f32.mrf.mxu0 }
 0x39b   :  { %v4278_v48 = vpop.f32.mrf.mxu0 }
 0x39c   :  { %v4279_v37 = vadd.f32 %v4278_v48, %v4277_v14  ;;  %v2676_v14 = vrot.slane %v2671_v58, %v5346_v46  ;;  %v4949_v58 = vld [vmem:[#allocation13 + $0x324] ss:$28 sps:$4 sm:$0xff]  }
 0x39d   :  { %v4280_v36 = vpop.f32.mrf.mxu0 }
 0x39e   :  { %v2640_v22 = vadd.f32 %v4279_v37, %v4116_v39 }
 0x39f   :  { %v4281_v40 = vpop.f32.mrf.mxu0 }
 0x3a0   :  { %v4282_v24 = vadd.f32 %v4281_v40, %v4280_v36 }
 0x3a1   :  { %v4283_v31 = vpop.f32.mrf.mxu0 }
 0x3a2   :  { %v2643_v55 = vadd.f32 %v4282_v24, %v4116_v39 }
 0x3a3   :  { %v4284_v9 = vpop.f32.mrf.mxu0 }
 0x3a4   :  { %v2653_v43 = vpack.c.bf16 %v2643_v55, %v2640_v22  ;;  %v4285_v44 = vadd.f32 %v4284_v9, %v4283_v31 }
 0x3a5   :  { %v4286_v49 = vpop.f32.mrf.mxu0 }
 0x3a6   :  { %2796 = vmatmul.mubr.bf16.vlgmr.msra.gmra.mxu1 %v2653_v43  ;;  %v2648_v56 = vadd.f32 %v4285_v44, %v4116_v39 }
 0x3a7   :  { %v4287_v57 = vpop.f32.mrf.mxu0  ;;  %2805 = vmatprep.mubr.bf16.mxu1 %v5197_v38  ;;  %3617 = vmatpush1.bf16.msra.mxu1 %v4811_v41  ;;  %v4841_v38 = vld [vmem:[#allocation13 + $0x78] ss:$28 sps:$4 sm:$0xff]  }
 0x3a8   :  { %3618 = vmatprep.subr.bf16.mxu1 %v4819_v45  ;;  %v2654_v61 = vpack.c.bf16 %v2648_v56, %v2648_v56  ;;  %v4904_v57 = vld [vmem:[#allocation13 + $0x198] ss:$28 sps:$4 sm:$0xff]  }
 0x3ab   :  { %3619 = vmatpush1.bf16.msra.mxu1 %v4817_v52  ;;  %v4908_v52 = vld [vmem:[#allocation13 + $0x1a0] ss:$28 sps:$4 sm:$0xff]  }
 0x3ac   :  { %3620 = vmatprep.subr.bf16.mxu1 %v4825_v59 }
 0x3ae   :  { %2806 = vmatmul.mubr.bf16.gmra.mxu1 %v2654_v61  ;;  %v4911_v61 = vld [vmem:[#allocation13 + $0x164] ss:$28 sps:$4 sm:$0xff]  }
 0x3af   :  { %3621 = vmatpush1.bf16.msra.mxu1 %v4823_v60 }
 0x3b0   :  { %3622 = vmatprep.subr.bf16.mxu1 %v4831_v1  ;;  %v4912_v1 = vld [vmem:[#allocation13 + $0x328] ss:$28 sps:$4 sm:$0xff]  }
 0x3b3   :  { %3623 = vmatpush1.bf16.msra.mxu1 %v4829_v2 }
 0x3b4   :  { %3624 = vmatprep.subr.bf16.mxu1 %v4837_v3 }
 0x3b7   :  { %3625 = vmatpush1.bf16.msra.mxu1 %v4835_v4 }
 0x3b8   :  { %3626 = vmatprep.subr.bf16.mxu1 %v4843_v6  ;;  %v4909_v6 = vld [vmem:[#allocation13 + $0x160] ss:$28 sps:$4 sm:$0xff]  }
 0x3bb   :  { %3627 = vmatpush1.bf16.msra.mxu1 %v4841_v38  ;;  %v4913_v38 = vld [vmem:[#allocation13 + $0x168] ss:$28 sps:$4 sm:$0xff]  }
 0x3bc   :  { %3628 = vmatprep.subr.bf16.mxu1 %v4849_v7 }
 0x3bf   :  { %3629 = vmatpush1.bf16.msra.mxu1 %v4847_v8  ;;  %v4916_v8 = vld [vmem:[#allocation13 + $0x12c] ss:$28 sps:$4 sm:$0xff]  }
 0x3c0   :  { %3630 = vmatprep.subr.bf16.mxu1 %v4855_v12  ;;  %v4917_v12 = vld [vmem:[#allocation13 + $0x2f0] ss:$28 sps:$4 sm:$0xff]  }
 0x3c3   :  { %3631 = vmatpush1.bf16.msra.mxu1 %v4853_v13  ;;  %v4914_v13 = vld [vmem:[#allocation13 + $0x128] ss:$28 sps:$4 sm:$0xff]  }
 0x3c4   :  { %3632 = vmatprep.subr.bf16.mxu1 %v4861_v16  ;;  %v4918_v16 = vld [vmem:[#allocation13 + $0x130] ss:$28 sps:$4 sm:$0xff]  }
 0x3c7   :  { %3633 = vmatpush2.bf16.msra.mxu1 %v4859_v17 }
 0x3c8   :  { %3634 = vmatprep.subr.bf16.mxu1 %v4867_v18  ;;  %v4921_v18 = vld [vmem:[#allocation13 + $0xf4] ss:$28 sps:$4 sm:$0xff]  }
 0x3cb   :  { %3635 = vmatpush2.bf16.msra.mxu1 %v4865_v28  ;;  %v4922_v28 = vld [vmem:[#allocation13 + $0x2b8] ss:$28 sps:$4 sm:$0xff]  }
 0x3cc   :  { %3636 = vmatprep.subr.bf16.mxu1 %v4873_v19  ;;  %v4919_v19 = vld [vmem:[#allocation13 + $0xf0] ss:$28 sps:$4 sm:$0xff]  }
 0x3cf   :  { %3637 = vmatpush2.bf16.msra.mxu1 %v4871_v20  ;;  %v4923_v20 = vld [vmem:[#allocation13 + $0xf8] ss:$28 sps:$4 sm:$0xff]  }
 0x3d0   :  { %3638 = vmatprep.subr.bf16.mxu1 %v4879_v23  ;;  %v4926_v23 = vld [vmem:[#allocation13 + $0xbc] ss:$28 sps:$4 sm:$0xff]  }
 0x3d3   :  { %3639 = vmatpush2.bf16.msra.mxu1 %v4877_v26  ;;  %v4927_v26 = vld [vmem:[#allocation13 + $0x280] ss:$28 sps:$4 sm:$0xff]  }
 0x3d4   :  { %3640 = vmatprep.subr.bf16.mxu1 %v4885_v51  ;;  %v4924_v51 = vld [vmem:[#allocation13 + $0xb8] ss:$28 sps:$4 sm:$0xff]  }
 0x3d7   :  { %3641 = vmatpush2.bf16.msra.mxu1 %v4883_v47  ;;  %v4928_v47 = vld [vmem:[#allocation13 + $0xc0] ss:$28 sps:$4 sm:$0xff]  }
 0x3d8   :  { %3642 = vmatprep.subr.bf16.mxu1 %v4891_v27  ;;  %v4932_v27 = vld [vmem:[#allocation13 + $0x248] ss:$28 sps:$4 sm:$0xff]  }
 0x3db   :  { %3643 = vmatpush2.bf16.msra.mxu1 %v4889_v54  ;;  %v4933_v54 = vld [vmem:[#allocation13 + $0x88] ss:$28 sps:$4 sm:$0xff]  }
 0x3dc   :  { %3644 = vmatprep.subr.bf16.mxu1 %v4897_v5  ;;  %v4937_v5 = vld [vmem:[#allocation13 + $0x210] ss:$28 sps:$4 sm:$0xff]  }
 0x3df   :  { %3645 = vmatpush2.bf16.msra.mxu1 %v4895_v15  ;;  %v4938_v15 = vld [vmem:[#allocation13 + $0x50] ss:$28 sps:$4 sm:$0xff]  }
 0x3e0   :  { %3646 = vmatprep.subr.bf16.mxu1 %v4903_v33  ;;  %v4942_v33 = vld [vmem:[#allocation13 + $0x1d8] ss:$28 sps:$4 sm:$0xff]  }
 0x3e3   :  { %3647 = vmatpush2.bf16.msra.mxu1 %v4901_v21  ;;  %v4943_v21 = vld [vmem:[#allocation13 + $0x18] ss:$28 sps:$4 sm:$0xff]  }
 0x3e4   :  { %4289 = vmatprep.subr.bf16.mxu1 %v4907_v42  ;;  %v4944_v42 = vld [vmem:[#allocation13 + $0x358] ss:$28 sps:$4 sm:$0xff]  }
 0x466   :  { %v2797_v25 = vpop.f32.mrf.mxu1 }
 0x467   :  { %v2798_v40 = vadd.f32 %v2797_v25, %v2676_v14  ;;  %v4947_v25 = vld [vmem:[#allocation13 + $0x320] ss:$28 sps:$4 sm:$0xff]  }
 0x468   :  { %v2799_v48 = vpop.f32.mrf.mxu1 }
 0x469   :  { %v2800_v37 = vadd.f32 %v2799_v48, %v2680_v62  ;;  %v2814_v43 = vmax.f32 %v2798_v40, 0.0  ;;  %v4955_v48 = vld [vmem:[#allocation13 + $0x2b4] ss:$28 sps:$4 sm:$0xff]   ;;  %v4961_v40 = vld [vmem:[#allocation13 + $0x244] ss:$28 sps:$4 sm:$0xff]  }
 0x46a   :  { %v2801_v36 = vpop.f32.mrf.mxu1 }
 0x46b   :  { %v2802_v39 = vadd.f32 %v2801_v36, %v2676_v14  ;;  %v2815_v9 = vmax.f32 %v2800_v37, 0.0  ;;  %v4953_v36 = vld [vmem:[#allocation13 + $0x2b0] ss:$28 sps:$4 sm:$0xff]   ;;  %v4958_v37 = vld [vmem:[#allocation13 + $0x27c] ss:$28 sps:$4 sm:$0xff]  }
 0x46c   :  { %v2803_v24 = vpop.f32.mrf.mxu1 }
 0x46d   :  { %v2804_v31 = vadd.f32 %v2803_v24, %v2680_v62  ;;  %v2816_v22 = vmax.f32 %v2802_v39, 0.0  ;;  %v4956_v39 = vld [vmem:[#allocation13 + $0x278] ss:$28 sps:$4 sm:$0xff]   ;;  %v4959_v24 = vld [vmem:[#allocation13 + $0x240] ss:$28 sps:$4 sm:$0xff]  }
 0x46e   :  { %v2807_v55 = vpop.f32.mrf.mxu1 }
 0x46f   :  { %v2817_v41 = vmax.f32 %v2804_v31, 0.0  ;;  %v5417_v56 = vpack.c.bf16 %v2816_v22, %v2814_v43  ;;  %v2808_v59 = vadd.f32 %v2807_v55, %v2676_v14  ;;  %v4950_v14 = vld [vmem:[#allocation13 + $0x2e8] ss:$28 sps:$4 sm:$0xff]   ;;  %v4967_v55 = vld [vmem:[#allocation13 + $0x1d4] ss:$28 sps:$4 sm:$0xff]  }
 0x470   :  { %v2809_v44 = vpop.f32.mrf.mxu1  ;;  %v4964_v31 = vld [vmem:[#allocation13 + $0x20c] ss:$28 sps:$4 sm:$0xff]  }
 0x471   :  { %v2821_v45 = vpack.c.bf16 %v2817_v41, %v2815_v9  ;;  %v2810_v49 = vadd.f32 %v2809_v44, %v2680_v62  ;;  %v2818_v7 = vmax.f32 %v2808_v59, 0.0  ;;  %v4952_v62 = vld [vmem:[#allocation13 + $0x2ec] ss:$28 sps:$4 sm:$0xff]   ;;  %v5438_v41 = vld [vmem:[%s5472_s10] sm:$0xff]  ;;  %s5198_s10 = smov [#allocation14]  }
 0x472   :  { %v2811_v60 = vpop.f32.mrf.mxu1  ;;  %v4962_v22 = vld [vmem:[#allocation13 + $0x208] ss:$28 sps:$4 sm:$0xff]   ;;  %v4965_v9 = vld [vmem:[#allocation13 + $0x1d0] ss:$28 sps:$4 sm:$0xff]   ;;  %v2957_v43 = vrot.slane %v5438_v41, %v5346_v46  ;;  %v2965_v44 = vrot.slane %v5438_v41, %v404_v0  ;;  %s3813_s22 = sshll.u32 %s5198_s10, 4  ;;  %s3814_s22 = int_to_ptr.vmem [resolvable:$true] %s3813_s22 }
 0x473   :  { %v2819_v2 = vmax.f32 %v2810_v49, 0.0  ;;  %3597 = vmatprep.mubr.bf16.mxu0 %v2821_v45  ;;  %3648 = vmatprep.mubr.bf16.mxu1 %v2821_v45  ;;  %v5425_v17 = vpack.c.bf16 %v2818_v7, %v2818_v7  ;;  %v2969_v49 = vrot.slane %v5438_v41, %v408_v63  ;;  %s5150_s23 = scalar_lea.vmem %s3814_s22, 2688  ;;  %p5155_p8 = scmp.lt.s32.totalorder %s3814_s22, %s3814_s22 }
 0x474   :  { %v2812_v3 = vpop.f32.mrf.mxu1  ;;  %3598 = vmatmul.mubr.bf16.vlgmr.msra.gmra.mxu0 %v5417_v56  ;;  %3649 = vmatmul.mubr.bf16.vlgmr.msra.gmra.mxu1 %v5417_v56  ;;  %p5151_p7 = scmp.ne.s32.totalorder %s3814_s22, %s5150_s23  ;;  %p5156_p9 = scmp.lt.s32.totalorder %s5150_s23, %s5150_s23 }
 0x475   :  { %v5421_v4 = vpack.c.bf16 %v2819_v2, %v2819_v2  ;;  %3668 = vmatpush1.bf16.msra.mxu0 %v4904_v57  ;;  %4290 = vmatpush3.bf16.msra.mxu1 %v4908_v52 }
 0x476   :  { %3669 = vmatprep.subr.bf16.mxu0 %v4911_v61  ;;  %4291 = vmatprep.subr.bf16.mxu1 %v4912_v1  ;;  %p5157_p10 = por %p5156_p9, %p5155_p8 }
 0x477   :  { %3607 = vmatprep.mubr.bf16.mxu0 %v5421_v4  ;;  %3658 = vmatprep.mubr.bf16.mxu1 %v5421_v4 }
 0x478   :  { %p5158_p11 = pnand %p5157_p10, %p5151_p7 }
 0x479   :  { %3670 = vmatpush1.bf16.msra.mxu0 %v4909_v6  ;;  %4292 = vmatpush3.bf16.msra.mxu1 %v4913_v38 }
 0x47a   :  { %3671 = vmatprep.subr.bf16.mxu0 %v4916_v8  ;;  %4293 = vmatprep.subr.bf16.mxu1 %v4917_v12 }
 0x47c   :  { %3608 = vmatmul.mubr.bf16.gmra.mxu0 %v5425_v17  ;;  %3659 = vmatmul.mubr.bf16.gmra.mxu1 %v5425_v17 }
 0x47d   :  { %3672 = vmatpush1.bf16.msra.mxu0 %v4914_v13  ;;  %4294 = vmatpush3.bf16.msra.mxu1 %v4918_v16 }
 0x47e   :  { %3699 = vmatprep.mubr.bf16.mxu0 %v2821_v45  ;;  %3750 = vmatprep.mubr.bf16.mxu1 %v2821_v45  ;;  %v2961_v45 = vrot.slane %v5438_v41, %v5351_v50 }
 0x47f   :  { %3673 = vmatprep.subr.bf16.mxu0 %v4921_v18  ;;  %4295 = vmatprep.subr.bf16.mxu1 %v4922_v28 }
 0x481   :  { %3674 = vmatpush1.bf16.msra.mxu0 %v4919_v19  ;;  %4296 = vmatpush3.bf16.msra.mxu1 %v4923_v20 }
 0x482   :  { %3675 = vmatprep.subr.bf16.mxu0 %v4926_v23  ;;  %4297 = vmatprep.subr.bf16.mxu1 %v4927_v26 }
 0x485   :  { %3676 = vmatpush1.bf16.msra.mxu0 %v4924_v51  ;;  %4298 = vmatpush3.bf16.msra.mxu1 %v4928_v47 }
 0x486   :  { %3677 = vmatprep.subr.bf16.mxu0 %v4931_v10  ;;  %4299 = vmatprep.subr.bf16.mxu1 %v4932_v27 }
 0x489   :  { %3678 = vmatpush1.bf16.msra.mxu0 %v4929_v30  ;;  %4300 = vmatpush3.bf16.msra.mxu1 %v4933_v54 }
 0x48a   :  { %3679 = vmatprep.subr.bf16.mxu0 %v4936_v53  ;;  %4301 = vmatprep.subr.bf16.mxu1 %v4937_v5 }
 0x48d   :  { %3680 = vmatpush1.bf16.msra.mxu0 %v4934_v32  ;;  %4302 = vmatpush3.bf16.msra.mxu1 %v4938_v15 }
 0x48e   :  { %3681 = vmatprep.subr.bf16.mxu0 %v4941_v11  ;;  %4303 = vmatprep.subr.bf16.mxu1 %v4942_v33 }
 0x491   :  { %3682 = vmatpush1.bf16.msra.mxu0 %v4939_v34  ;;  %4304 = vmatpush3.bf16.msra.mxu1 %v4943_v21  ;;  %v2980_v34 = vsub.s32 6, %v5343_v29 }
 0x492   :  { %3683 = vmatprep.subr.bf16.mxu0 %v4946_v35 }
 0x493   :  { %v2981_v35 = vrot.slane %v5438_v41, %v2980_v34 }
 0x494   :  { %3751 = vmatmul.mubr.bf16.vlgmr.msra.gmra.mxu1 %v5417_v56 }
 0x495   :  { %3684 = vmatpush2.bf16.msra.mxu0 %v4944_v42  ;;  %3758 = vmatprep.mubr.bf16.mxu1 %v5421_v4 }
 0x496   :  { %3685 = vmatprep.subr.bf16.mxu0 %v4949_v58 }
 0x499   :  { %3686 = vmatpush2.bf16.msra.mxu0 %v4947_v25 }
 0x49a   :  { %3687 = vmatprep.subr.bf16.mxu0 %v4952_v62 }
 0x49c   :  { %3759 = vmatmul.mubr.bf16.gmra.mxu1 %v5425_v17 }
 0x49d   :  { %3688 = vmatpush2.bf16.msra.mxu0 %v4950_v14 }
 0x49e   :  { %3689 = vmatprep.subr.bf16.mxu0 %v4955_v48 }
 0x4a1   :  { %3690 = vmatpush2.bf16.msra.mxu0 %v4953_v36 }
 0x4a2   :  { %3691 = vmatprep.subr.bf16.mxu0 %v4958_v37 }
 0x4a5   :  { %3692 = vmatpush2.bf16.msra.mxu0 %v4956_v39 }
 0x4a6   :  { %3693 = vmatprep.subr.bf16.mxu0 %v4961_v40 }
 0x4a9   :  { %3694 = vmatpush2.bf16.msra.mxu0 %v4959_v24 }
 0x4aa   :  { %3695 = vmatprep.subr.bf16.mxu0 %v4964_v31 }
 0x4ad   :  { %3696 = vmatpush2.bf16.msra.mxu0 %v4962_v22 }
 0x4ae   :  { %3697 = vmatprep.subr.bf16.mxu0 %v4967_v55 }
 0x4b1   :  { %3698 = vmatpush2.bf16.msra.mxu0 %v4965_v9 }
 0x4b4   :  { %3700 = vmatmul.mubr.bf16.vlgmr.msra.gmra.mxu0 %v5417_v56 }
 0x4b5   :  { %3709 = vmatprep.mubr.bf16.mxu0 %v5421_v4 }
 0x4bc   :  { %3710 = vmatmul.mubr.bf16.gmra.mxu0 %v5425_v17 }
 0x534   :  { %v3599_v57 = vpop.f32.mrf.mxu0  ;;  %v3650_v52 = vpop.f32.mrf.mxu1 }
 0x535   :  { %v3600_v56 = vadd.f32 %v3599_v57, %v2957_v43  ;;  %v3651_v59 = vadd.f32 %v3650_v52, %v2965_v44 }
 0x536   :  { %v3601_v60 = vpop.f32.mrf.mxu0  ;;  %v3652_v61 = vpop.f32.mrf.mxu1 }
 0x537   :  { %4968 = vtanh.f32 %v3600_v56  ;;  %v3602_v1 = vadd.f32 %v3601_v60, %v2961_v45  ;;  %v3653_v46 = vadd.f32 %v3652_v61, %v2969_v49 }
 0x538   :  { %4970 = vtanh.f32 %v3651_v59  ;;  %v3603_v2 = vpop.f32.mrf.mxu0  ;;  %v3654_v3 = vpop.f32.mrf.mxu1 }
 0x539   :  { %4972 = vtanh.f32 %v3602_v1  ;;  %v3604_v0 = vadd.f32 %v3603_v2, %v2957_v43  ;;  %v3655_v4 = vadd.f32 %v3654_v3, %v2965_v44 }
 0x53a   :  { %4974 = vtanh.f32 %v3653_v46  ;;  %v3605_v50 = vpop.f32.mrf.mxu0  ;;  %v3656_v6 = vpop.f32.mrf.mxu1 }
 0x53b   :  { %4976 = vtanh.f32 %v3604_v0  ;;  %v3606_v63 = vadd.f32 %v3605_v50, %v2961_v45  ;;  %v3657_v38 = vadd.f32 %v3656_v6, %v2969_v49 }
 0x53c   :  { %4978 = vtanh.f32 %v3655_v4  ;;  %v3609_v7 = vpop.f32.mrf.mxu0  ;;  %v3660_v8 = vpop.f32.mrf.mxu1 }
 0x53d   :  { %4980 = vtanh.f32 %v3606_v63  ;;  %v3610_v12 = vadd.f32 %v3609_v7, %v2957_v43  ;;  %v3661_v13 = vadd.f32 %v3660_v8, %v2965_v44  ;;  %v2972_v43 = vsub.s32 4, %v5343_v29 }
 0x53e   :  { %4982 = vtanh.f32 %v3657_v38  ;;  %v3611_v16 = vpop.f32.mrf.mxu0  ;;  %v3662_v17 = vpop.f32.mrf.mxu1  ;;  %v2976_v44 = vsub.s32 5, %v5343_v29 }
 0x53f   :  { %4984 = vtanh.f32 %v3610_v12  ;;  %v3612_v18 = vadd.f32 %v3611_v16, %v2961_v45  ;;  %v3663_v28 = vadd.f32 %v3662_v17, %v2969_v49  ;;  %v2973_v49 = vrot.slane %v5438_v41, %v2972_v43 }
 0x540   :  { %4986 = vtanh.f32 %v3661_v13  ;;  %v3613_v19 = vpop.f32.mrf.mxu0  ;;  %v3664_v20 = vpop.f32.mrf.mxu1  ;;  %v2977_v57 = vrot.slane %v5438_v41, %v2976_v44 }
 0x541   :  { %4988 = vtanh.f32 %v3612_v18 }
 0x542   :  { %4990 = vtanh.f32 %v3663_v28  ;;  %v3614_v23 = vpop.f32.mrf.mxu0  ;;  %v3665_v26 = vpop.f32.mrf.mxu1 }
 0x544   :  { %v4969_v51 = vpop.eup %4968 }
 0x545   :  { %v4971_v47 = vpop.eup %4970  ;;  %3787 = vst [vmem:[#allocation14] sm:$0xff] %v4969_v51 }
 0x546   :  { %v4973_v10 = vpop.eup %4972  ;;  %3789 = vst [vmem:[#allocation14 + $0x10] sm:$0xff] %v4971_v47 }
 0x547   :  { %v4975_v27 = vpop.eup %4974  ;;  %3788 = vst [vmem:[#allocation14 + $0x8] sm:$0xff] %v4973_v10 }
 0x548   :  { %v4977_v30 = vpop.eup %4976  ;;  %3790 = vst [vmem:[#allocation14 + $0x18] sm:$0xff] %v4975_v27 }
 0x549   :  { %v4979_v54 = vpop.eup %4978  ;;  %3794 = vst [vmem:[#allocation14 + $0x38] sm:$0xff] %v4977_v30 }
 0x54a   :  { %v4981_v53 = vpop.eup %4980  ;;  %3796 = vst [vmem:[#allocation14 + $0x48] sm:$0xff] %v4979_v54 }
 0x54b   :  { %v4983_v5 = vpop.eup %4982  ;;  %3795 = vst [vmem:[#allocation14 + $0x40] sm:$0xff] %v4981_v53 }
 0x54c   :  { %v4985_v32 = vpop.eup %4984  ;;  %3797 = vst [vmem:[#allocation14 + $0x50] sm:$0xff] %v4983_v5 }
 0x54d   :  { %v4987_v15 = vpop.eup %4986  ;;  %3801 = vst [vmem:[#allocation14 + $0x70] sm:$0xff] %v4985_v32 }
 0x54e   :  { %v4989_v11 = vpop.eup %4988  ;;  %3803 = vst [vmem:[#allocation14 + $0x80] sm:$0xff] %v4987_v15 }
 0x54f   :  { %v4991_v33 = vpop.eup %4990  ;;  %3802 = vst [vmem:[#allocation14 + $0x78] sm:$0xff] %v4989_v11 }
 0x550   :  { %3804 = vst [vmem:[#allocation14 + $0x88] sm:$0xff] %v4991_v33 }
 0x554   :  { %v4305_v21 = vpop.f32.mrf.mxu1 }
 0x556   :  { %v4306_v42 = vpop.f32.mrf.mxu1 }
 0x557   :  { %v4307_v58 = vadd.f32 %v4306_v42, %v4305_v21 }
 0x558   :  { %v4308_v25 = vpop.f32.mrf.mxu1 }
 0x559   :  { %v3753_v62 = vadd.f32 %v4307_v58, %v2981_v35 }
 0x55a   :  { %v4309_v14 = vpop.f32.mrf.mxu1 }
 0x55b   :  { %4992 = vtanh.f32 %v3753_v62  ;;  %v4310_v48 = vadd.f32 %v4309_v14, %v4308_v25 }
 0x55c   :  { %v4311_v36 = vpop.f32.mrf.mxu1 }
 0x55d   :  { %v3756_v37 = vadd.f32 %v4310_v48, %v2981_v35 }
 0x55e   :  { %v4312_v39 = vpop.f32.mrf.mxu1 }
 0x55f   :  { %4994 = vtanh.f32 %v3756_v37  ;;  %v4313_v40 = vadd.f32 %v4312_v39, %v4311_v36 }
 0x560   :  { %v4314_v24 = vpop.f32.mrf.mxu1 }
 0x561   :  { %v3761_v31 = vadd.f32 %v4313_v40, %v2981_v35 }
 0x562   :  { %v4315_v22 = vpop.f32.mrf.mxu1 }
 0x563   :  { %4996 = vtanh.f32 %v3761_v31 }
 0x568   :  { %v4993_v55 = vpop.eup %4992 }
 0x569   :  { %3793 = vst [vmem:[#allocation14 + $0x30] sm:$0xff] %v4993_v55 }
 0x56c   :  { %v4995_v9 = vpop.eup %4994 }
 0x56d   :  { %3800 = vst [vmem:[#allocation14 + $0x68] sm:$0xff] %v4995_v9 }
 0x570   :  { %v4997_v45 = vpop.eup %4996 }
 0x571   :  { %3807 = vst [vmem:[#allocation14 + $0xa0] sm:$0xff] %v4997_v45 }
 0x574   :  { %v3701_v52 = vpop.f32.mrf.mxu0 }
 0x575   :  { %v3702_v56 = vadd.f32 %v3701_v52, %v2973_v49 }
 0x576   :  { %v3703_v59 = vpop.f32.mrf.mxu0 }
 0x577   :  { %4998 = vtanh.f32 %v3702_v56  ;;  %v3704_v60 = vadd.f32 %v3703_v59, %v2977_v57 }
 0x578   :  { %v3705_v61 = vpop.f32.mrf.mxu0 }
 0x579   :  { %5000 = vtanh.f32 %v3704_v60  ;;  %v3706_v1 = vadd.f32 %v3705_v61, %v2973_v49 }
 0x57a   :  { %v3707_v46 = vpop.f32.mrf.mxu0 }
 0x57b   :  { %5002 = vtanh.f32 %v3706_v1  ;;  %v3708_v2 = vadd.f32 %v3707_v46, %v2977_v57 }
 0x57c   :  { %v3711_v3 = vpop.f32.mrf.mxu0 }
 0x57d   :  { %5004 = vtanh.f32 %v3708_v2  ;;  %v3712_v29 = vadd.f32 %v3711_v3, %v2973_v49 }
 0x57e   :  { %v3713_v0 = vpop.f32.mrf.mxu0 }
 0x57f   :  { %5006 = vtanh.f32 %v3712_v29  ;;  %v3714_v4 = vadd.f32 %v3713_v0, %v2977_v57 }
 0x580   :  { %v3715_v50 = vpop.f32.mrf.mxu0 }
 0x581   :  { %5008 = vtanh.f32 %v3714_v4 }
 0x582   :  { %v3716_v41 = vpop.f32.mrf.mxu0 }
 0x584   :  { %v4999_v6 = vpop.eup %4998 }
 0x585   :  { %3791 = vst [vmem:[#allocation14 + $0x20] sm:$0xff] %v4999_v6 }
 0x586   :  { %v5001_v63 = vpop.eup %5000 }
 0x587   :  { %3792 = vst [vmem:[#allocation14 + $0x28] sm:$0xff] %v5001_v63 }
 0x588   :  { %v5003_v38 = vpop.eup %5002 }
 0x589   :  { %3798 = vst [vmem:[#allocation14 + $0x58] sm:$0xff] %v5003_v38 }
 0x58a   :  { %v5005_v7 = vpop.eup %5004 }
 0x58b   :  { %3799 = vst [vmem:[#allocation14 + $0x60] sm:$0xff] %v5005_v7 }
 0x58c   :  { %v5007_v8 = vpop.eup %5006 }
 0x58d   :  { %3805 = vst [vmem:[#allocation14 + $0x90] sm:$0xff] %v5007_v8 }
 0x58e   :  { %v5009_v12 = vpop.eup %5008 }
 0x58f   :  { %3806 = vst [vmem:[#allocation14 + $0x98] sm:$0xff] %v5009_v12 }
 0x590   :  { %5161 = shalt.err (!%p5158_p11)
}
 0x591   :  { %3819 = dma.vmem_to_hbm [thread:$0]  %s3814_s22, 2688, %s5473_s11, [#allocation4], %s5188_s3, %s5188_s3, %s5189_s19  }
 0x592   :  { %5178 = dma.done.wait [#allocation4], 2688  }
 0x593   :  { %5179 = vsyncadd [#allocation4], 4294964608 }
 0x594   :  { %3823 = vsyncpa [#allocation3], 1 }
 0x595   :  { %3824 = vsyncpa [#allocation6], 1 }
 0x596   :  { %3825 = vsyncpa [#allocation9], 1 }
 0x597   :  { %3826 = vsyncpa [#allocation12], 1 }
 0x598   :  { %3827 = vsyncpa [#allocation4], 1 }

</bundles_post_ra>
